<compile_context>
chip_gen: v5e
topology: v5e:2x2
jax: 0.10.0
libtpu: 0.0.40
codegen_flags: <defaults>
</compile_context>

<pallas_src>
import functools

import jax
import jax.numpy as jnp
from jax import lax
from jax.experimental import pallas as pl
from jax.experimental.pallas import tpu as pltpu

_MXU_DTYPE = jnp.bfloat16      # MXU operand dtype (f32 accumulation everywhere)


def _round_up(x, m):
    return (x + m - 1) // m * m


# --------------------------- conv + ReLU kernel -----------------------------

def _conv_relu_kernel(x_ref, w_ref, b_ref, o_ref, im_ref, *, kh, kw, wd, p):
    """Per image: build transposed im2col in VMEM, one MXU matmul, bias+ReLU.

    x_ref : (1, cin_p, s_pad)   zero-padded, flattened NCHW image (c, h*w)
    w_ref : (cout_p, kh*kw*cin_p)
    b_ref : (cout_p, 1)
    o_ref : (1, cout_p, p)      out[co, oh*wd + ow]  (only ow < OW is valid)
    im_ref: (kh*kw*cin_p, s_pad) f32 VMEM scratch (transposed im2col)
    """
    cin_p = x_ref.shape[1]
    s_pad = x_ref.shape[2]
    x_full = x_ref[0]                                       # (cin_p, s_pad)
    for ih in range(kh):
        for iw in range(kw):
            off = ih * wd + iw
            row = (ih * kw + iw) * cin_p
            # rolled[:, s] == x_full[:, s + off]  for s < s_pad - off
            im_ref[row:row + cin_p, :] = pltpu.roll(
                x_full, shift=(-off) % s_pad, axis=1)
    acc = jnp.dot(w_ref[...].astype(_MXU_DTYPE),
                  im_ref[:, :p].astype(_MXU_DTYPE),
                  preferred_element_type=jnp.float32)       # (cout_p, p)
    o_ref[0] = jnp.maximum(acc + b_ref[...], 0.0).astype(o_ref.dtype)


def _conv_pallas(x_flat, w2d, b_col, *, kh, kw, wd, p):
    bsz, cin_p, s_pad = x_flat.shape
    cout_p, kkc = w2d.shape
    kernel = functools.partial(_conv_relu_kernel, kh=kh, kw=kw, wd=wd, p=p)
    return pl.pallas_call(
        kernel,
        out_shape=jax.ShapeDtypeStruct((bsz, cout_p, p), jnp.float32),
        grid=(bsz,),
        in_specs=[
            pl.BlockSpec((1, cin_p, s_pad), lambda i: (i, 0, 0)),
            pl.BlockSpec((cout_p, kkc), lambda i: (0, 0)),
            pl.BlockSpec((cout_p, 1), lambda i: (0, 0)),
        ],
        out_specs=pl.BlockSpec((1, cout_p, p), lambda i: (i, 0, 0)),
        scratch_shapes=[pltpu.VMEM((kkc, s_pad), jnp.float32)],
        compiler_params=pltpu.CompilerParams(
            dimension_semantics=("parallel",)),
    )(x_flat, w2d, b_col)


def conv2d_relu(x, w2d, b_col, *, cout, kh, kw):
    """relu(conv2d(x) + b); x NCHW (B, Cin, H, W); weights pre-packed."""
    bsz, cin, h, wd = x.shape
    oh, ow = h - kh + 1, wd - kw + 1
    cout_p = w2d.shape[0]
    cin_p = w2d.shape[1] // (kh * kw)
    p = _round_up(oh * wd, 128)
    s_pad = _round_up(max(h * wd, p + (kh - 1) * wd + (kw - 1)), 128)
    xf = x.reshape(bsz, cin, h * wd)
    xf = jnp.pad(xf, ((0, 0), (0, cin_p - cin), (0, s_pad - h * wd)))
    y = _conv_pallas(xf, w2d, b_col, kh=kh, kw=kw, wd=wd, p=p)  # (B, cout_p, p)
    y = y[:, :cout, :oh * wd].reshape(bsz, cout, oh, wd)[:, :, :, :ow]
    return y                                                    # (B, cout, OH, OW)


def maxpool2x2(x):
    """2x2 stride-2 max pool, NCHW, plain JAX (XLA fuses it)."""
    bsz, c, h, wd = x.shape
    return x.reshape(bsz, c, h // 2, 2, wd // 2, 2).max(axis=(3, 5))


# ------------------------ fused fc1/fc2/fc3 kernel ---------------------------

def _fc_fused_kernel(x_ref, w1_ref, b1_ref, w2_ref, b2_ref, w3_ref, b3_ref, o_ref):
    def dense(h, w_ref, b_ref, relu):
        y = jnp.dot(h.astype(_MXU_DTYPE), w_ref[...].astype(_MXU_DTYPE),
                    preferred_element_type=jnp.float32) + b_ref[...]
        return jnp.maximum(y, 0.0) if relu else y

    h = dense(x_ref[...], w1_ref, b1_ref, True)
    h = dense(h, w2_ref, b2_ref, True)
    o_ref[...] = dense(h, w3_ref, b3_ref, False).astype(o_ref.dtype)


def fc_fused(x, w1, b1, w2, b2, w3, b3):
    """x:(B,512 padded).  All intermediates stay on-chip; one HBM write."""
    bsz, k = x.shape
    n1, n2, n3 = w1.shape[1], w2.shape[1], w3.shape[1]
    tm = bsz if bsz <= 256 else 256
    return pl.pallas_call(
        _fc_fused_kernel,
        out_shape=jax.ShapeDtypeStruct((bsz, n3), jnp.float32),
        grid=(pl.cdiv(bsz, tm),),
        in_specs=[
            pl.BlockSpec((tm, k), lambda i: (i, 0)),
            pl.BlockSpec((k, n1), lambda i: (0, 0)),
            pl.BlockSpec((1, n1), lambda i: (0, 0)),
            pl.BlockSpec((n1, n2), lambda i: (0, 0)),
            pl.BlockSpec((1, n2), lambda i: (0, 0)),
            pl.BlockSpec((n2, n3), lambda i: (0, 0)),
            pl.BlockSpec((1, n3), lambda i: (0, 0)),
        ],
        out_specs=pl.BlockSpec((tm, n3), lambda i: (i, 0)),
        compiler_params=pltpu.CompilerParams(
            dimension_semantics=("parallel",)),
    )(x, w1, b1, w2, b2, w3, b3)


# ----------------------- one-time parameter packing --------------------------

def _prep_conv(w, bias, cin_p, cout_p):
    cout, cin, kh, kw = w.shape
    wt = jnp.transpose(w, (0, 2, 3, 1))                              # (cout,kh,kw,cin)
    wt = jnp.pad(wt, ((0, cout_p - cout), (0, 0), (0, 0), (0, cin_p - cin)))
    w2d = wt.reshape(cout_p, kh * kw * cin_p)                        # row = (kh,kw,ci)
    b_col = jnp.pad(bias, (0, cout_p - cout)).reshape(cout_p, 1)
    return w2d, b_col


def _prep_fc(w, bias, k_p, n_p):
    n, k = w.shape
    w_t = jnp.pad(w.T, ((0, k_p - k), (0, n_p - n)))                 # (k_p, n_p)
    b_row = jnp.pad(bias, (0, n_p - n)).reshape(1, n_p)
    return w_t, b_row


def prepare_params(params):
    """Hoisted out of the forward pass: transpose / zero-pad all weights once."""
    prep = {}
    prep["conv1_w"], prep["conv1_b"] = _prep_conv(params["conv1_w"], params["conv1_b"], 8, 8)
    prep["conv2_w"], prep["conv2_b"] = _prep_conv(params["conv2_w"], params["conv2_b"], 8, 16)
    prep["fc1_w"], prep["fc1_b"] = _prep_fc(params["fc1_w"], params["fc1_b"], 512, 128)
    prep["fc2_w"], prep["fc2_b"] = _prep_fc(params["fc2_w"], params["fc2_b"], 128, 128)
    prep["fc3_w"], prep["fc3_b"] = _prep_fc(params["fc3_w"], params["fc3_b"], 128, 128)
    return prep


# -------------------------------- forward ------------------------------------

@functools.partial(jax.jit, static_argnames=("num_classes",))
def cnn_cifar_forward(prep, x, *, num_classes):
    # x: (B, 3, 32, 32) NCHW float32
    y = conv2d_relu(x, prep["conv1_w"], prep["conv1_b"], cout=6, kh=5, kw=5)   # (B,6,28,28)
    y = maxpool2x2(y)                                                          # (B,6,14,14)
    y = conv2d_relu(y, prep["conv2_w"], prep["conv2_b"], cout=16, kh=5, kw=5)  # (B,16,10,10)
    y = maxpool2x2(y)                                                          # (B,16,5,5)
    flat = y.reshape(y.shape[0], 16 * 5 * 5)            # == PyTorch .view(-1, 400) (NCHW order)
    flat = jnp.pad(flat, ((0, 0), (0, prep["fc1_w"].shape[0] - flat.shape[1])))
    logits = fc_fused(flat, prep["fc1_w"], prep["fc1_b"],
                      prep["fc2_w"], prep["fc2_b"],
                      prep["fc3_w"], prep["fc3_b"])                            # (B,128)
    return logits[:, :num_classes]


# ------------------------------ reference / init ------------------------------

def reference_forward(params, x):
    """Pure-JAX (XLA, f32) reference of the same PyTorch forward."""
    def conv(z, w, bias):
        y = lax.conv_general_dilated(z, w, (1, 1), "VALID",
                                     dimension_numbers=("NCHW", "OIHW", "NCHW"))
        return jax.nn.relu(y + bias.reshape(1, -1, 1, 1))

    y = maxpool2x2(conv(x, params["conv1_w"], params["conv1_b"]))
    y = maxpool2x2(conv(y, params["conv2_w"], params["conv2_b"]))
    f = y.reshape(y.shape[0], -1)
    f = jax.nn.relu(f @ params["fc1_w"].T + params["fc1_b"])
    f = jax.nn.relu(f @ params["fc2_w"].T + params["fc2_b"])
    return f @ params["fc3_w"].T + params["fc3_b"]


def init_params(key, num_classes=10):
    """Deterministic init mimicking PyTorch default (uniform +/- 1/sqrt(fan_in))."""
    def uniform(k, shape, fan_in):
        bound = 1.0 / (fan_in ** 0.5)
        return jax.random.uniform(k, shape, jnp.float32, -bound, bound)

    ks = jax.random.split(key, 10)
    return {
        "conv1_w": uniform(ks[0], (6, 3, 5, 5), 3 * 25),
        "conv1_b": uniform(ks[1], (6,), 3 * 25),
        "conv2_w": uniform(ks[2], (16, 6, 5, 5), 6 * 25),
        "conv2_b": uniform(ks[3], (16,), 6 * 25),
        "fc1_w":   uniform(ks[4], (120, 400), 400),
        "fc1_b":   uniform(ks[5], (120,), 400),
        "fc2_w":   uniform(ks[6], (84, 120), 120),
        "fc2_b":   uniform(ks[7], (84,), 120),
        "fc3_w":   uniform(ks[8], (num_classes, 84), 84),
        "fc3_b":   uniform(ks[9], (num_classes,), 84),
    }


if __name__ == "__main__":
    key = jax.random.PRNGKey(0)
    pkey, xkey = jax.random.split(key)
    num_classes = 10
    params = init_params(pkey, num_classes=num_classes)
    prep = prepare_params(params)
    # CIFAR-style input; 32x32 spatial is required by the .view(-1, 16*5*5).
    x = jax.random.normal(xkey, (2, 3, 32, 32), jnp.float32)

    out = cnn_cifar_forward(prep, x, num_classes=num_classes)
    out = jax.block_until_ready(out)
    assert out.shape == (2, num_classes), out.shape
    assert bool(jnp.all(jnp.isfinite(out)))

    # Loose check vs. the f32 XLA reference (bf16 MXU operands add ~1-2% noise;
    # a real indexing/layout bug would be off by ~100%).
    ref = reference_forward(params, x)
    rel = float(jnp.linalg.norm(out - ref) / (jnp.linalg.norm(ref) + 1e-6))
    assert rel < 0.1, f"relative L2 error too large: {rel}"

    print("KERNEL_OK")
</pallas_src>

<mosaic_0001>
module attributes {stable_mosaic.version = 11 : i64} {
  func.func @_conv_relu_kernel(%arg0: i32, %arg1: memref<1x8x1152xf32, #tpu.memory_space<vmem>>, %arg2: memref<8x200xf32, #tpu.memory_space<vmem>>, %arg3: memref<8x1xf32, #tpu.memory_space<vmem>>, %arg4: memref<1x8x896xf32, #tpu.memory_space<vmem>>, %arg5: memref<200x1152xf32, #tpu.memory_space<vmem>>) attributes {dimension_semantics = [#tpu.dimension_semantics<parallel>], iteration_bounds = array<i64: 2>, scalar_prefetch = 0 : i64, scratch_operands = 1 : i64, tpu.core_type = #tpu.core_type<tc>, window_params = [{transform_indices = @transform_0, window_bounds = array<i64: 1, 8, 1152>}, {pipeline_mode = #tpu.pipeline_mode<synchronous>, transform_indices = @transform_1, window_bounds = array<i64: 8, 200>}, {pipeline_mode = #tpu.pipeline_mode<synchronous>, transform_indices = @transform_2, window_bounds = array<i64: 8, 1>}, {transform_indices = @transform_3, window_bounds = array<i64: 1, 8, 896>}]} {
    %c0 = arith.constant 0 : index
    %c0_0 = arith.constant 0 : index
    %c0_1 = arith.constant 0 : index
    %0 = vector.load %arg1[%c0, %c0_0, %c0_1] : memref<1x8x1152xf32, #tpu.memory_space<vmem>>, vector<1x8x1152xf32>
    %1 = vector.shape_cast %0 : vector<1x8x1152xf32> to vector<8x1152xf32>
    %c0_i32 = arith.constant 0 : i32
    %2 = tpu.dynamic_rotate %1 by %c0_i32 dim 1 : vector<8x1152xf32>, i32 -> vector<8x1152xf32>
    %c0_2 = arith.constant 0 : index
    %c0_3 = arith.constant 0 : index
    %3 = vector.load %arg5[%c0_2, %c0_3] : memref<200x1152xf32, #tpu.memory_space<vmem>>, vector<8x1152xf32>
    tpu.vector_store %arg5[%c0_2, %c0_3], %2 {strides = array<i32>} : memref<200x1152xf32, #tpu.memory_space<vmem>>, vector<8x1152xf32>,
    %c1151_i32 = arith.constant 1151 : i32
    %4 = tpu.dynamic_rotate %1 by %c1151_i32 dim 1 : vector<8x1152xf32>, i32 -> vector<8x1152xf32>
    %c8 = arith.constant 8 : index
    %c0_4 = arith.constant 0 : index
    %5 = vector.load %arg5[%c8, %c0_4] : memref<200x1152xf32, #tpu.memory_space<vmem>>, vector<8x1152xf32>
    tpu.vector_store %arg5[%c8, %c0_4], %4 {strides = array<i32>} : memref<200x1152xf32, #tpu.memory_space<vmem>>, vector<8x1152xf32>,
    %c1150_i32 = arith.constant 1150 : i32
    %6 = tpu.dynamic_rotate %1 by %c1150_i32 dim 1 : vector<8x1152xf32>, i32 -> vector<8x1152xf32>
    %c16 = arith.constant 16 : index
    %c0_5 = arith.constant 0 : index
    %7 = vector.load %arg5[%c16, %c0_5] : memref<200x1152xf32, #tpu.memory_space<vmem>>, vector<8x1152xf32>
    tpu.vector_store %arg5[%c16, %c0_5], %6 {strides = array<i32>} : memref<200x1152xf32, #tpu.memory_space<vmem>>, vector<8x1152xf32>,
    %c1149_i32 = arith.constant 1149 : i32
    %8 = tpu.dynamic_rotate %1 by %c1149_i32 dim 1 : vector<8x1152xf32>, i32 -> vector<8x1152xf32>
    %c24 = arith.constant 24 : index
    %c0_6 = arith.constant 0 : index
    %9 = vector.load %arg5[%c24, %c0_6] : memref<200x1152xf32, #tpu.memory_space<vmem>>, vector<8x1152xf32>
    tpu.vector_store %arg5[%c24, %c0_6], %8 {strides = array<i32>} : memref<200x1152xf32, #tpu.memory_space<vmem>>, vector<8x1152xf32>,
    %c1148_i32 = arith.constant 1148 : i32
    %10 = tpu.dynamic_rotate %1 by %c1148_i32 dim 1 : vector<8x1152xf32>, i32 -> vector<8x1152xf32>
    %c32 = arith.constant 32 : index
    %c0_7 = arith.constant 0 : index
    %11 = vector.load %arg5[%c32, %c0_7] : memref<200x1152xf32, #tpu.memory_space<vmem>>, vector<8x1152xf32>
    tpu.vector_store %arg5[%c32, %c0_7], %10 {strides = array<i32>} : memref<200x1152xf32, #tpu.memory_space<vmem>>, vector<8x1152xf32>,
    %c1120_i32 = arith.constant 1120 : i32
    %12 = tpu.dynamic_rotate %1 by %c1120_i32 dim 1 : vector<8x1152xf32>, i32 -> vector<8x1152xf32>
    %c40 = arith.constant 40 : index
    %c0_8 = arith.constant 0 : index
    %13 = vector.load %arg5[%c40, %c0_8] : memref<200x1152xf32, #tpu.memory_space<vmem>>, vector<8x1152xf32>
    tpu.vector_store %arg5[%c40, %c0_8], %12 {strides = array<i32>} : memref<200x1152xf32, #tpu.memory_space<vmem>>, vector<8x1152xf32>,
    %c1119_i32 = arith.constant 1119 : i32
    %14 = tpu.dynamic_rotate %1 by %c1119_i32 dim 1 : vector<8x1152xf32>, i32 -> vector<8x1152xf32>
    %c48 = arith.constant 48 : index
    %c0_9 = arith.constant 0 : index
    %15 = vector.load %arg5[%c48, %c0_9] : memref<200x1152xf32, #tpu.memory_space<vmem>>, vector<8x1152xf32>
    tpu.vector_store %arg5[%c48, %c0_9], %14 {strides = array<i32>} : memref<200x1152xf32, #tpu.memory_space<vmem>>, vector<8x1152xf32>,
    %c1118_i32 = arith.constant 1118 : i32
    %16 = tpu.dynamic_rotate %1 by %c1118_i32 dim 1 : vector<8x1152xf32>, i32 -> vector<8x1152xf32>
    %c56 = arith.constant 56 : index
    %c0_10 = arith.constant 0 : index
    %17 = vector.load %arg5[%c56, %c0_10] : memref<200x1152xf32, #tpu.memory_space<vmem>>, vector<8x1152xf32>
    tpu.vector_store %arg5[%c56, %c0_10], %16 {strides = array<i32>} : memref<200x1152xf32, #tpu.memory_space<vmem>>, vector<8x1152xf32>,
    %c1117_i32 = arith.constant 1117 : i32
    %18 = tpu.dynamic_rotate %1 by %c1117_i32 dim 1 : vector<8x1152xf32>, i32 -> vector<8x1152xf32>
    %c64 = arith.constant 64 : index
    %c0_11 = arith.constant 0 : index
    %19 = vector.load %arg5[%c64, %c0_11] : memref<200x1152xf32, #tpu.memory_space<vmem>>, vector<8x1152xf32>
    tpu.vector_store %arg5[%c64, %c0_11], %18 {strides = array<i32>} : memref<200x1152xf32, #tpu.memory_space<vmem>>, vector<8x1152xf32>,
    %c1116_i32 = arith.constant 1116 : i32
    %20 = tpu.dynamic_rotate %1 by %c1116_i32 dim 1 : vector<8x1152xf32>, i32 -> vector<8x1152xf32>
    %c72 = arith.constant 72 : index
    %c0_12 = arith.constant 0 : index
    %21 = vector.load %arg5[%c72, %c0_12] : memref<200x1152xf32, #tpu.memory_space<vmem>>, vector<8x1152xf32>
    tpu.vector_store %arg5[%c72, %c0_12], %20 {strides = array<i32>} : memref<200x1152xf32, #tpu.memory_space<vmem>>, vector<8x1152xf32>,
    %c1088_i32 = arith.constant 1088 : i32
    %22 = tpu.dynamic_rotate %1 by %c1088_i32 dim 1 : vector<8x1152xf32>, i32 -> vector<8x1152xf32>
    %c80 = arith.constant 80 : index
    %c0_13 = arith.constant 0 : index
    %23 = vector.load %arg5[%c80, %c0_13] : memref<200x1152xf32, #tpu.memory_space<vmem>>, vector<8x1152xf32>
    tpu.vector_store %arg5[%c80, %c0_13], %22 {strides = array<i32>} : memref<200x1152xf32, #tpu.memory_space<vmem>>, vector<8x1152xf32>,
    %c1087_i32 = arith.constant 1087 : i32
    %24 = tpu.dynamic_rotate %1 by %c1087_i32 dim 1 : vector<8x1152xf32>, i32 -> vector<8x1152xf32>
    %c88 = arith.constant 88 : index
    %c0_14 = arith.constant 0 : index
    %25 = vector.load %arg5[%c88, %c0_14] : memref<200x1152xf32, #tpu.memory_space<vmem>>, vector<8x1152xf32>
    tpu.vector_store %arg5[%c88, %c0_14], %24 {strides = array<i32>} : memref<200x1152xf32, #tpu.memory_space<vmem>>, vector<8x1152xf32>,
    %c1086_i32 = arith.constant 1086 : i32
    %26 = tpu.dynamic_rotate %1 by %c1086_i32 dim 1 : vector<8x1152xf32>, i32 -> vector<8x1152xf32>
    %c96 = arith.constant 96 : index
    %c0_15 = arith.constant 0 : index
    %27 = vector.load %arg5[%c96, %c0_15] : memref<200x1152xf32, #tpu.memory_space<vmem>>, vector<8x1152xf32>
    tpu.vector_store %arg5[%c96, %c0_15], %26 {strides = array<i32>} : memref<200x1152xf32, #tpu.memory_space<vmem>>, vector<8x1152xf32>,
    %c1085_i32 = arith.constant 1085 : i32
    %28 = tpu.dynamic_rotate %1 by %c1085_i32 dim 1 : vector<8x1152xf32>, i32 -> vector<8x1152xf32>
    %c104 = arith.constant 104 : index
    %c0_16 = arith.constant 0 : index
    %29 = vector.load %arg5[%c104, %c0_16] : memref<200x1152xf32, #tpu.memory_space<vmem>>, vector<8x1152xf32>
    tpu.vector_store %arg5[%c104, %c0_16], %28 {strides = array<i32>} : memref<200x1152xf32, #tpu.memory_space<vmem>>, vector<8x1152xf32>,
    %c1084_i32 = arith.constant 1084 : i32
    %30 = tpu.dynamic_rotate %1 by %c1084_i32 dim 1 : vector<8x1152xf32>, i32 -> vector<8x1152xf32>
    %c112 = arith.constant 112 : index
    %c0_17 = arith.constant 0 : index
    %31 = vector.load %arg5[%c112, %c0_17] : memref<200x1152xf32, #tpu.memory_space<vmem>>, vector<8x1152xf32>
    tpu.vector_store %arg5[%c112, %c0_17], %30 {strides = array<i32>} : memref<200x1152xf32, #tpu.memory_space<vmem>>, vector<8x1152xf32>,
    %c1056_i32 = arith.constant 1056 : i32
    %32 = tpu.dynamic_rotate %1 by %c1056_i32 dim 1 : vector<8x1152xf32>, i32 -> vector<8x1152xf32>
    %c120 = arith.constant 120 : index
    %c0_18 = arith.constant 0 : index
    %33 = vector.load %arg5[%c120, %c0_18] : memref<200x1152xf32, #tpu.memory_space<vmem>>, vector<8x1152xf32>
    tpu.vector_store %arg5[%c120, %c0_18], %32 {strides = array<i32>} : memref<200x1152xf32, #tpu.memory_space<vmem>>, vector<8x1152xf32>,
    %c1055_i32 = arith.constant 1055 : i32
    %34 = tpu.dynamic_rotate %1 by %c1055_i32 dim 1 : vector<8x1152xf32>, i32 -> vector<8x1152xf32>
    %c128 = arith.constant 128 : index
    %c0_19 = arith.constant 0 : index
    %35 = vector.load %arg5[%c128, %c0_19] : memref<200x1152xf32, #tpu.memory_space<vmem>>, vector<8x1152xf32>
    tpu.vector_store %arg5[%c128, %c0_19], %34 {strides = array<i32>} : memref<200x1152xf32, #tpu.memory_space<vmem>>, vector<8x1152xf32>,
    %c1054_i32 = arith.constant 1054 : i32
    %36 = tpu.dynamic_rotate %1 by %c1054_i32 dim 1 : vector<8x1152xf32>, i32 -> vector<8x1152xf32>
    %c136 = arith.constant 136 : index
    %c0_20 = arith.constant 0 : index
    %37 = vector.load %arg5[%c136, %c0_20] : memref<200x1152xf32, #tpu.memory_space<vmem>>, vector<8x1152xf32>
    tpu.vector_store %arg5[%c136, %c0_20], %36 {strides = array<i32>} : memref<200x1152xf32, #tpu.memory_space<vmem>>, vector<8x1152xf32>,
    %c1053_i32 = arith.constant 1053 : i32
    %38 = tpu.dynamic_rotate %1 by %c1053_i32 dim 1 : vector<8x1152xf32>, i32 -> vector<8x1152xf32>
    %c144 = arith.constant 144 : index
    %c0_21 = arith.constant 0 : index
    %39 = vector.load %arg5[%c144, %c0_21] : memref<200x1152xf32, #tpu.memory_space<vmem>>, vector<8x1152xf32>
    tpu.vector_store %arg5[%c144, %c0_21], %38 {strides = array<i32>} : memref<200x1152xf32, #tpu.memory_space<vmem>>, vector<8x1152xf32>,
    %c1052_i32 = arith.constant 1052 : i32
    %40 = tpu.dynamic_rotate %1 by %c1052_i32 dim 1 : vector<8x1152xf32>, i32 -> vector<8x1152xf32>
    %c152 = arith.constant 152 : index
    %c0_22 = arith.constant 0 : index
    %41 = vector.load %arg5[%c152, %c0_22] : memref<200x1152xf32, #tpu.memory_space<vmem>>, vector<8x1152xf32>
    tpu.vector_store %arg5[%c152, %c0_22], %40 {strides = array<i32>} : memref<200x1152xf32, #tpu.memory_space<vmem>>, vector<8x1152xf32>,
    %c1024_i32 = arith.constant 1024 : i32
    %42 = tpu.dynamic_rotate %1 by %c1024_i32 dim 1 : vector<8x1152xf32>, i32 -> vector<8x1152xf32>
    %c160 = arith.constant 160 : index
    %c0_23 = arith.constant 0 : index
    %43 = vector.load %arg5[%c160, %c0_23] : memref<200x1152xf32, #tpu.memory_space<vmem>>, vector<8x1152xf32>
    tpu.vector_store %arg5[%c160, %c0_23], %42 {strides = array<i32>} : memref<200x1152xf32, #tpu.memory_space<vmem>>, vector<8x1152xf32>,
    %c1023_i32 = arith.constant 1023 : i32
    %44 = tpu.dynamic_rotate %1 by %c1023_i32 dim 1 : vector<8x1152xf32>, i32 -> vector<8x1152xf32>
    %c168 = arith.constant 168 : index
    %c0_24 = arith.constant 0 : index
    %45 = vector.load %arg5[%c168, %c0_24] : memref<200x1152xf32, #tpu.memory_space<vmem>>, vector<8x1152xf32>
    tpu.vector_store %arg5[%c168, %c0_24], %44 {strides = array<i32>} : memref<200x1152xf32, #tpu.memory_space<vmem>>, vector<8x1152xf32>,
    %c1022_i32 = arith.constant 1022 : i32
    %46 = tpu.dynamic_rotate %1 by %c1022_i32 dim 1 : vector<8x1152xf32>, i32 -> vector<8x1152xf32>
    %c176 = arith.constant 176 : index
    %c0_25 = arith.constant 0 : index
    %47 = vector.load %arg5[%c176, %c0_25] : memref<200x1152xf32, #tpu.memory_space<vmem>>, vector<8x1152xf32>
    tpu.vector_store %arg5[%c176, %c0_25], %46 {strides = array<i32>} : memref<200x1152xf32, #tpu.memory_space<vmem>>, vector<8x1152xf32>,
    %c1021_i32 = arith.constant 1021 : i32
    %48 = tpu.dynamic_rotate %1 by %c1021_i32 dim 1 : vector<8x1152xf32>, i32 -> vector<8x1152xf32>
    %c184 = arith.constant 184 : index
    %c0_26 = arith.constant 0 : index
    %49 = vector.load %arg5[%c184, %c0_26] : memref<200x1152xf32, #tpu.memory_space<vmem>>, vector<8x1152xf32>
    tpu.vector_store %arg5[%c184, %c0_26], %48 {strides = array<i32>} : memref<200x1152xf32, #tpu.memory_space<vmem>>, vector<8x1152xf32>,
    %c1020_i32 = arith.constant 1020 : i32
    %50 = tpu.dynamic_rotate %1 by %c1020_i32 dim 1 : vector<8x1152xf32>, i32 -> vector<8x1152xf32>
    %c192 = arith.constant 192 : index
    %c0_27 = arith.constant 0 : index
    %51 = vector.load %arg5[%c192, %c0_27] : memref<200x1152xf32, #tpu.memory_space<vmem>>, vector<8x1152xf32>
    tpu.vector_store %arg5[%c192, %c0_27], %50 {strides = array<i32>} : memref<200x1152xf32, #tpu.memory_space<vmem>>, vector<8x1152xf32>,
    %c0_28 = arith.constant 0 : index
    %c0_29 = arith.constant 0 : index
    %52 = vector.load %arg2[%c0_28, %c0_29] : memref<8x200xf32, #tpu.memory_space<vmem>>, vector<8x200xf32>
    %53 = arith.truncf %52 : vector<8x200xf32> to vector<8x200xbf16>
    %c0_30 = arith.constant 0 : index
    %c0_31 = arith.constant 0 : index
    %54 = vector.load %arg5[%c0_30, %c0_31] : memref<200x1152xf32, #tpu.memory_space<vmem>>, vector<200x896xf32>
    %55 = arith.truncf %54 : vector<200x896xf32> to vector<200x896xbf16>
    %cst = arith.constant dense<0.000000e+00> : vector<8x896xf32>
    %56 = tpu.matmul %53, %55, %cst {dimension_numbers = #tpu.dot_dimension_numbers<[1], [0], [0], [1], [0, 0, 1, 1], [], []>} : vector<8x200xbf16>, vector<200x896xbf16>, vector<8x896xf32> -> vector<8x896xf32>
    %c0_32 = arith.constant 0 : index
    %c0_33 = arith.constant 0 : index
    %57 = vector.load %arg3[%c0_32, %c0_33] : memref<8x1xf32, #tpu.memory_space<vmem>>, vector<8x1xf32>
    %58 = vector.broadcast %57 : vector<8x1xf32> to vector<8x896xf32>
    %59 = arith.addf %56, %58 : vector<8x896xf32>
    %cst_34 = arith.constant 0.000000e+00 : f32
    %60 = vector.broadcast %cst_34 : f32 to vector<8x896xf32>
    %61 = arith.maximumf %59, %60 : vector<8x896xf32>
    %c0_35 = arith.constant 0 : index
    %c0_36 = arith.constant 0 : index
    %c0_37 = arith.constant 0 : index
    %62 = vector.load %arg4[%c0_35, %c0_36, %c0_37] : memref<1x8x896xf32, #tpu.memory_space<vmem>>, vector<1x8x896xf32>
    %63 = vector.shape_cast %62 : vector<1x8x896xf32> to vector<8x896xf32>
    %64 = vector.shape_cast %61 : vector<8x896xf32> to vector<1x8x896xf32>
    tpu.vector_store %arg4[%c0_35, %c0_36, %c0_37], %64 {strides = array<i32>} : memref<1x8x896xf32, #tpu.memory_space<vmem>>, vector<1x8x896xf32>,
    return
  }
  func.func @transform_0(%arg0: i32) -> (i32, i32, i32) {
    %c0_i32 = arith.constant 0 : i32
    %c0_i32_0 = arith.constant 0 : i32
    %c0_i32_1 = arith.constant 0 : i32
    return %arg0, %c0_i32, %c0_i32_0 : i32, i32, i32
  }
  func.func @transform_1(%arg0: i32) -> (i32, i32) {
    %c0_i32 = arith.constant 0 : i32
    %c0_i32_0 = arith.constant 0 : i32
    %c0_i32_1 = arith.constant 0 : i32
    return %c0_i32, %c0_i32_0 : i32, i32
  }
  func.func @transform_2(%arg0: i32) -> (i32, i32) {
    %c0_i32 = arith.constant 0 : i32
    %c0_i32_0 = arith.constant 0 : i32
    %c0_i32_1 = arith.constant 0 : i32
    return %c0_i32, %c0_i32_0 : i32, i32
  }
  func.func @transform_3(%arg0: i32) -> (i32, i32, i32) {
    %c0_i32 = arith.constant 0 : i32
    %c0_i32_0 = arith.constant 0 : i32
    %c0_i32_1 = arith.constant 0 : i32
    return %arg0, %c0_i32, %c0_i32_0 : i32, i32, i32
  }
}

module attributes {stable_mosaic.version = 11 : i64} {
  func.func @_conv_relu_kernel(%arg0: i32, %arg1: memref<1x8x384xf32, #tpu.memory_space<vmem>>, %arg2: memref<16x200xf32, #tpu.memory_space<vmem>>, %arg3: memref<16x1xf32, #tpu.memory_space<vmem>>, %arg4: memref<1x16x256xf32, #tpu.memory_space<vmem>>, %arg5: memref<200x384xf32, #tpu.memory_space<vmem>>) attributes {dimension_semantics = [#tpu.dimension_semantics<parallel>], iteration_bounds = array<i64: 2>, scalar_prefetch = 0 : i64, scratch_operands = 1 : i64, tpu.core_type = #tpu.core_type<tc>, window_params = [{transform_indices = @transform_0, window_bounds = array<i64: 1, 8, 384>}, {pipeline_mode = #tpu.pipeline_mode<synchronous>, transform_indices = @transform_1, window_bounds = array<i64: 16, 200>}, {pipeline_mode = #tpu.pipeline_mode<synchronous>, transform_indices = @transform_2, window_bounds = array<i64: 16, 1>}, {transform_indices = @transform_3, window_bounds = array<i64: 1, 16, 256>}]} {
    %c0 = arith.constant 0 : index
    %c0_0 = arith.constant 0 : index
    %c0_1 = arith.constant 0 : index
    %0 = vector.load %arg1[%c0, %c0_0, %c0_1] : memref<1x8x384xf32, #tpu.memory_space<vmem>>, vector<1x8x384xf32>
    %1 = vector.shape_cast %0 : vector<1x8x384xf32> to vector<8x384xf32>
    %c0_i32 = arith.constant 0 : i32
    %2 = tpu.dynamic_rotate %1 by %c0_i32 dim 1 : vector<8x384xf32>, i32 -> vector<8x384xf32>
    %c0_2 = arith.constant 0 : index
    %c0_3 = arith.constant 0 : index
    %3 = vector.load %arg5[%c0_2, %c0_3] : memref<200x384xf32, #tpu.memory_space<vmem>>, vector<8x384xf32>
    tpu.vector_store %arg5[%c0_2, %c0_3], %2 {strides = array<i32>} : memref<200x384xf32, #tpu.memory_space<vmem>>, vector<8x384xf32>,
    %c383_i32 = arith.constant 383 : i32
    %4 = tpu.dynamic_rotate %1 by %c383_i32 dim 1 : vector<8x384xf32>, i32 -> vector<8x384xf32>
    %c8 = arith.constant 8 : index
    %c0_4 = arith.constant 0 : index
    %5 = vector.load %arg5[%c8, %c0_4] : memref<200x384xf32, #tpu.memory_space<vmem>>, vector<8x384xf32>
    tpu.vector_store %arg5[%c8, %c0_4], %4 {strides = array<i32>} : memref<200x384xf32, #tpu.memory_space<vmem>>, vector<8x384xf32>,
    %c382_i32 = arith.constant 382 : i32
    %6 = tpu.dynamic_rotate %1 by %c382_i32 dim 1 : vector<8x384xf32>, i32 -> vector<8x384xf32>
    %c16 = arith.constant 16 : index
    %c0_5 = arith.constant 0 : index
    %7 = vector.load %arg5[%c16, %c0_5] : memref<200x384xf32, #tpu.memory_space<vmem>>, vector<8x384xf32>
    tpu.vector_store %arg5[%c16, %c0_5], %6 {strides = array<i32>} : memref<200x384xf32, #tpu.memory_space<vmem>>, vector<8x384xf32>,
    %c381_i32 = arith.constant 381 : i32
    %8 = tpu.dynamic_rotate %1 by %c381_i32 dim 1 : vector<8x384xf32>, i32 -> vector<8x384xf32>
    %c24 = arith.constant 24 : index
    %c0_6 = arith.constant 0 : index
    %9 = vector.load %arg5[%c24, %c0_6] : memref<200x384xf32, #tpu.memory_space<vmem>>, vector<8x384xf32>
    tpu.vector_store %arg5[%c24, %c0_6], %8 {strides = array<i32>} : memref<200x384xf32, #tpu.memory_space<vmem>>, vector<8x384xf32>,
    %c380_i32 = arith.constant 380 : i32
    %10 = tpu.dynamic_rotate %1 by %c380_i32 dim 1 : vector<8x384xf32>, i32 -> vector<8x384xf32>
    %c32 = arith.constant 32 : index
    %c0_7 = arith.constant 0 : index
    %11 = vector.load %arg5[%c32, %c0_7] : memref<200x384xf32, #tpu.memory_space<vmem>>, vector<8x384xf32>
    tpu.vector_store %arg5[%c32, %c0_7], %10 {strides = array<i32>} : memref<200x384xf32, #tpu.memory_space<vmem>>, vector<8x384xf32>,
    %c370_i32 = arith.constant 370 : i32
    %12 = tpu.dynamic_rotate %1 by %c370_i32 dim 1 : vector<8x384xf32>, i32 -> vector<8x384xf32>
    %c40 = arith.constant 40 : index
    %c0_8 = arith.constant 0 : index
    %13 = vector.load %arg5[%c40, %c0_8] : memref<200x384xf32, #tpu.memory_space<vmem>>, vector<8x384xf32>
    tpu.vector_store %arg5[%c40, %c0_8], %12 {strides = array<i32>} : memref<200x384xf32, #tpu.memory_space<vmem>>, vector<8x384xf32>,
    %c369_i32 = arith.constant 369 : i32
    %14 = tpu.dynamic_rotate %1 by %c369_i32 dim 1 : vector<8x384xf32>, i32 -> vector<8x384xf32>
    %c48 = arith.constant 48 : index
    %c0_9 = arith.constant 0 : index
    %15 = vector.load %arg5[%c48, %c0_9] : memref<200x384xf32, #tpu.memory_space<vmem>>, vector<8x384xf32>
    tpu.vector_store %arg5[%c48, %c0_9], %14 {strides = array<i32>} : memref<200x384xf32, #tpu.memory_space<vmem>>, vector<8x384xf32>,
    %c368_i32 = arith.constant 368 : i32
    %16 = tpu.dynamic_rotate %1 by %c368_i32 dim 1 : vector<8x384xf32>, i32 -> vector<8x384xf32>
    %c56 = arith.constant 56 : index
    %c0_10 = arith.constant 0 : index
    %17 = vector.load %arg5[%c56, %c0_10] : memref<200x384xf32, #tpu.memory_space<vmem>>, vector<8x384xf32>
    tpu.vector_store %arg5[%c56, %c0_10], %16 {strides = array<i32>} : memref<200x384xf32, #tpu.memory_space<vmem>>, vector<8x384xf32>,
    %c367_i32 = arith.constant 367 : i32
    %18 = tpu.dynamic_rotate %1 by %c367_i32 dim 1 : vector<8x384xf32>, i32 -> vector<8x384xf32>
    %c64 = arith.constant 64 : index
    %c0_11 = arith.constant 0 : index
    %19 = vector.load %arg5[%c64, %c0_11] : memref<200x384xf32, #tpu.memory_space<vmem>>, vector<8x384xf32>
    tpu.vector_store %arg5[%c64, %c0_11], %18 {strides = array<i32>} : memref<200x384xf32, #tpu.memory_space<vmem>>, vector<8x384xf32>,
    %c366_i32 = arith.constant 366 : i32
    %20 = tpu.dynamic_rotate %1 by %c366_i32 dim 1 : vector<8x384xf32>, i32 -> vector<8x384xf32>
    %c72 = arith.constant 72 : index
    %c0_12 = arith.constant 0 : index
    %21 = vector.load %arg5[%c72, %c0_12] : memref<200x384xf32, #tpu.memory_space<vmem>>, vector<8x384xf32>
    tpu.vector_store %arg5[%c72, %c0_12], %20 {strides = array<i32>} : memref<200x384xf32, #tpu.memory_space<vmem>>, vector<8x384xf32>,
    %c356_i32 = arith.constant 356 : i32
    %22 = tpu.dynamic_rotate %1 by %c356_i32 dim 1 : vector<8x384xf32>, i32 -> vector<8x384xf32>
    %c80 = arith.constant 80 : index
    %c0_13 = arith.constant 0 : index
    %23 = vector.load %arg5[%c80, %c0_13] : memref<200x384xf32, #tpu.memory_space<vmem>>, vector<8x384xf32>
    tpu.vector_store %arg5[%c80, %c0_13], %22 {strides = array<i32>} : memref<200x384xf32, #tpu.memory_space<vmem>>, vector<8x384xf32>,
    %c355_i32 = arith.constant 355 : i32
    %24 = tpu.dynamic_rotate %1 by %c355_i32 dim 1 : vector<8x384xf32>, i32 -> vector<8x384xf32>
    %c88 = arith.constant 88 : index
    %c0_14 = arith.constant 0 : index
    %25 = vector.load %arg5[%c88, %c0_14] : memref<200x384xf32, #tpu.memory_space<vmem>>, vector<8x384xf32>
    tpu.vector_store %arg5[%c88, %c0_14], %24 {strides = array<i32>} : memref<200x384xf32, #tpu.memory_space<vmem>>, vector<8x384xf32>,
    %c354_i32 = arith.constant 354 : i32
    %26 = tpu.dynamic_rotate %1 by %c354_i32 dim 1 : vector<8x384xf32>, i32 -> vector<8x384xf32>
    %c96 = arith.constant 96 : index
    %c0_15 = arith.constant 0 : index
    %27 = vector.load %arg5[%c96, %c0_15] : memref<200x384xf32, #tpu.memory_space<vmem>>, vector<8x384xf32>
    tpu.vector_store %arg5[%c96, %c0_15], %26 {strides = array<i32>} : memref<200x384xf32, #tpu.memory_space<vmem>>, vector<8x384xf32>,
    %c353_i32 = arith.constant 353 : i32
    %28 = tpu.dynamic_rotate %1 by %c353_i32 dim 1 : vector<8x384xf32>, i32 -> vector<8x384xf32>
    %c104 = arith.constant 104 : index
    %c0_16 = arith.constant 0 : index
    %29 = vector.load %arg5[%c104, %c0_16] : memref<200x384xf32, #tpu.memory_space<vmem>>, vector<8x384xf32>
    tpu.vector_store %arg5[%c104, %c0_16], %28 {strides = array<i32>} : memref<200x384xf32, #tpu.memory_space<vmem>>, vector<8x384xf32>,
    %c352_i32 = arith.constant 352 : i32
    %30 = tpu.dynamic_rotate %1 by %c352_i32 dim 1 : vector<8x384xf32>, i32 -> vector<8x384xf32>
    %c112 = arith.constant 112 : index
    %c0_17 = arith.constant 0 : index
    %31 = vector.load %arg5[%c112, %c0_17] : memref<200x384xf32, #tpu.memory_space<vmem>>, vector<8x384xf32>
    tpu.vector_store %arg5[%c112, %c0_17], %30 {strides = array<i32>} : memref<200x384xf32, #tpu.memory_space<vmem>>, vector<8x384xf32>,
    %c342_i32 = arith.constant 342 : i32
    %32 = tpu.dynamic_rotate %1 by %c342_i32 dim 1 : vector<8x384xf32>, i32 -> vector<8x384xf32>
    %c120 = arith.constant 120 : index
    %c0_18 = arith.constant 0 : index
    %33 = vector.load %arg5[%c120, %c0_18] : memref<200x384xf32, #tpu.memory_space<vmem>>, vector<8x384xf32>
    tpu.vector_store %arg5[%c120, %c0_18], %32 {strides = array<i32>} : memref<200x384xf32, #tpu.memory_space<vmem>>, vector<8x384xf32>,
    %c341_i32 = arith.constant 341 : i32
    %34 = tpu.dynamic_rotate %1 by %c341_i32 dim 1 : vector<8x384xf32>, i32 -> vector<8x384xf32>
    %c128 = arith.constant 128 : index
    %c0_19 = arith.constant 0 : index
    %35 = vector.load %arg5[%c128, %c0_19] : memref<200x384xf32, #tpu.memory_space<vmem>>, vector<8x384xf32>
    tpu.vector_store %arg5[%c128, %c0_19], %34 {strides = array<i32>} : memref<200x384xf32, #tpu.memory_space<vmem>>, vector<8x384xf32>,
    %c340_i32 = arith.constant 340 : i32
    %36 = tpu.dynamic_rotate %1 by %c340_i32 dim 1 : vector<8x384xf32>, i32 -> vector<8x384xf32>
    %c136 = arith.constant 136 : index
    %c0_20 = arith.constant 0 : index
    %37 = vector.load %arg5[%c136, %c0_20] : memref<200x384xf32, #tpu.memory_space<vmem>>, vector<8x384xf32>
    tpu.vector_store %arg5[%c136, %c0_20], %36 {strides = array<i32>} : memref<200x384xf32, #tpu.memory_space<vmem>>, vector<8x384xf32>,
    %c339_i32 = arith.constant 339 : i32
    %38 = tpu.dynamic_rotate %1 by %c339_i32 dim 1 : vector<8x384xf32>, i32 -> vector<8x384xf32>
    %c144 = arith.constant 144 : index
    %c0_21 = arith.constant 0 : index
    %39 = vector.load %arg5[%c144, %c0_21] : memref<200x384xf32, #tpu.memory_space<vmem>>, vector<8x384xf32>
    tpu.vector_store %arg5[%c144, %c0_21], %38 {strides = array<i32>} : memref<200x384xf32, #tpu.memory_space<vmem>>, vector<8x384xf32>,
    %c338_i32 = arith.constant 338 : i32
    %40 = tpu.dynamic_rotate %1 by %c338_i32 dim 1 : vector<8x384xf32>, i32 -> vector<8x384xf32>
    %c152 = arith.constant 152 : index
    %c0_22 = arith.constant 0 : index
    %41 = vector.load %arg5[%c152, %c0_22] : memref<200x384xf32, #tpu.memory_space<vmem>>, vector<8x384xf32>
    tpu.vector_store %arg5[%c152, %c0_22], %40 {strides = array<i32>} : memref<200x384xf32, #tpu.memory_space<vmem>>, vector<8x384xf32>,
    %c328_i32 = arith.constant 328 : i32
    %42 = tpu.dynamic_rotate %1 by %c328_i32 dim 1 : vector<8x384xf32>, i32 -> vector<8x384xf32>
    %c160 = arith.constant 160 : index
    %c0_23 = arith.constant 0 : index
    %43 = vector.load %arg5[%c160, %c0_23] : memref<200x384xf32, #tpu.memory_space<vmem>>, vector<8x384xf32>
    tpu.vector_store %arg5[%c160, %c0_23], %42 {strides = array<i32>} : memref<200x384xf32, #tpu.memory_space<vmem>>, vector<8x384xf32>,
    %c327_i32 = arith.constant 327 : i32
    %44 = tpu.dynamic_rotate %1 by %c327_i32 dim 1 : vector<8x384xf32>, i32 -> vector<8x384xf32>
    %c168 = arith.constant 168 : index
    %c0_24 = arith.constant 0 : index
    %45 = vector.load %arg5[%c168, %c0_24] : memref<200x384xf32, #tpu.memory_space<vmem>>, vector<8x384xf32>
    tpu.vector_store %arg5[%c168, %c0_24], %44 {strides = array<i32>} : memref<200x384xf32, #tpu.memory_space<vmem>>, vector<8x384xf32>,
    %c326_i32 = arith.constant 326 : i32
    %46 = tpu.dynamic_rotate %1 by %c326_i32 dim 1 : vector<8x384xf32>, i32 -> vector<8x384xf32>
    %c176 = arith.constant 176 : index
    %c0_25 = arith.constant 0 : index
    %47 = vector.load %arg5[%c176, %c0_25] : memref<200x384xf32, #tpu.memory_space<vmem>>, vector<8x384xf32>
    tpu.vector_store %arg5[%c176, %c0_25], %46 {strides = array<i32>} : memref<200x384xf32, #tpu.memory_space<vmem>>, vector<8x384xf32>,
    %c325_i32 = arith.constant 325 : i32
    %48 = tpu.dynamic_rotate %1 by %c325_i32 dim 1 : vector<8x384xf32>, i32 -> vector<8x384xf32>
    %c184 = arith.constant 184 : index
    %c0_26 = arith.constant 0 : index
    %49 = vector.load %arg5[%c184, %c0_26] : memref<200x384xf32, #tpu.memory_space<vmem>>, vector<8x384xf32>
    tpu.vector_store %arg5[%c184, %c0_26], %48 {strides = array<i32>} : memref<200x384xf32, #tpu.memory_space<vmem>>, vector<8x384xf32>,
    %c324_i32 = arith.constant 324 : i32
    %50 = tpu.dynamic_rotate %1 by %c324_i32 dim 1 : vector<8x384xf32>, i32 -> vector<8x384xf32>
    %c192 = arith.constant 192 : index
    %c0_27 = arith.constant 0 : index
    %51 = vector.load %arg5[%c192, %c0_27] : memref<200x384xf32, #tpu.memory_space<vmem>>, vector<8x384xf32>
    tpu.vector_store %arg5[%c192, %c0_27], %50 {strides = array<i32>} : memref<200x384xf32, #tpu.memory_space<vmem>>, vector<8x384xf32>,
    %c0_28 = arith.constant 0 : index
    %c0_29 = arith.constant 0 : index
    %52 = vector.load %arg2[%c0_28, %c0_29] : memref<16x200xf32, #tpu.memory_space<vmem>>, vector<16x200xf32>
    %53 = arith.truncf %52 : vector<16x200xf32> to vector<16x200xbf16>
    %c0_30 = arith.constant 0 : index
    %c0_31 = arith.constant 0 : index
    %54 = vector.load %arg5[%c0_30, %c0_31] : memref<200x384xf32, #tpu.memory_space<vmem>>, vector<200x256xf32>
    %55 = arith.truncf %54 : vector<200x256xf32> to vector<200x256xbf16>
    %cst = arith.constant dense<0.000000e+00> : vector<16x256xf32>
    %56 = tpu.matmul %53, %55, %cst {dimension_numbers = #tpu.dot_dimension_numbers<[1], [0], [0], [1], [0, 0, 1, 1], [], []>} : vector<16x200xbf16>, vector<200x256xbf16>, vector<16x256xf32> -> vector<16x256xf32>
    %c0_32 = arith.constant 0 : index
    %c0_33 = arith.constant 0 : index
    %57 = vector.load %arg3[%c0_32, %c0_33] : memref<16x1xf32, #tpu.memory_space<vmem>>, vector<16x1xf32>
    %58 = vector.broadcast %57 : vector<16x1xf32> to vector<16x256xf32>
    %59 = arith.addf %56, %58 : vector<16x256xf32>
    %cst_34 = arith.constant 0.000000e+00 : f32
    %60 = vector.broadcast %cst_34 : f32 to vector<16x256xf32>
    %61 = arith.maximumf %59, %60 : vector<16x256xf32>
    %c0_35 = arith.constant 0 : index
    %c0_36 = arith.constant 0 : index
    %c0_37 = arith.constant 0 : index
    %62 = vector.load %arg4[%c0_35, %c0_36, %c0_37] : memref<1x16x256xf32, #tpu.memory_space<vmem>>, vector<1x16x256xf32>
    %63 = vector.shape_cast %62 : vector<1x16x256xf32> to vector<16x256xf32>
    %64 = vector.shape_cast %61 : vector<16x256xf32> to vector<1x16x256xf32>
    tpu.vector_store %arg4[%c0_35, %c0_36, %c0_37], %64 {strides = array<i32>} : memref<1x16x256xf32, #tpu.memory_space<vmem>>, vector<1x16x256xf32>,
    return
  }
  func.func @transform_0(%arg0: i32) -> (i32, i32, i32) {
    %c0_i32 = arith.constant 0 : i32
    %c0_i32_0 = arith.constant 0 : i32
    %c0_i32_1 = arith.constant 0 : i32
    return %arg0, %c0_i32, %c0_i32_0 : i32, i32, i32
  }
  func.func @transform_1(%arg0: i32) -> (i32, i32) {
    %c0_i32 = arith.constant 0 : i32
    %c0_i32_0 = arith.constant 0 : i32
    %c0_i32_1 = arith.constant 0 : i32
    return %c0_i32, %c0_i32_0 : i32, i32
  }
  func.func @transform_2(%arg0: i32) -> (i32, i32) {
    %c0_i32 = arith.constant 0 : i32
    %c0_i32_0 = arith.constant 0 : i32
    %c0_i32_1 = arith.constant 0 : i32
    return %c0_i32, %c0_i32_0 : i32, i32
  }
  func.func @transform_3(%arg0: i32) -> (i32, i32, i32) {
    %c0_i32 = arith.constant 0 : i32
    %c0_i32_0 = arith.constant 0 : i32
    %c0_i32_1 = arith.constant 0 : i32
    return %arg0, %c0_i32, %c0_i32_0 : i32, i32, i32
  }
}

module attributes {stable_mosaic.version = 11 : i64} {
  func.func @_fc_fused_kernel(%arg0: i32, %arg1: memref<2x512xf32, #tpu.memory_space<vmem>>, %arg2: memref<512x128xf32, #tpu.memory_space<vmem>>, %arg3: memref<1x128xf32, #tpu.memory_space<vmem>>, %arg4: memref<128x128xf32, #tpu.memory_space<vmem>>, %arg5: memref<1x128xf32, #tpu.memory_space<vmem>>, %arg6: memref<128x128xf32, #tpu.memory_space<vmem>>, %arg7: memref<1x128xf32, #tpu.memory_space<vmem>>, %arg8: memref<2x128xf32, #tpu.memory_space<vmem>>) attributes {dimension_semantics = [#tpu.dimension_semantics<parallel>], iteration_bounds = array<i64: 1>, scalar_prefetch = 0 : i64, scratch_operands = 0 : i64, tpu.core_type = #tpu.core_type<tc>, window_params = [{transform_indices = @transform_0, window_bounds = array<i64: 2, 512>}, {pipeline_mode = #tpu.pipeline_mode<synchronous>, transform_indices = @transform_1, window_bounds = array<i64: 512, 128>}, {pipeline_mode = #tpu.pipeline_mode<synchronous>, transform_indices = @transform_2, window_bounds = array<i64: 1, 128>}, {pipeline_mode = #tpu.pipeline_mode<synchronous>, transform_indices = @transform_3, window_bounds = array<i64: 128, 128>}, {pipeline_mode = #tpu.pipeline_mode<synchronous>, transform_indices = @transform_4, window_bounds = array<i64: 1, 128>}, {pipeline_mode = #tpu.pipeline_mode<synchronous>, transform_indices = @transform_5, window_bounds = array<i64: 128, 128>}, {pipeline_mode = #tpu.pipeline_mode<synchronous>, transform_indices = @transform_6, window_bounds = array<i64: 1, 128>}, {transform_indices = @transform_7, window_bounds = array<i64: 2, 128>}]} {
    %c0 = arith.constant 0 : index
    %c0_0 = arith.constant 0 : index
    %0 = vector.load %arg1[%c0, %c0_0] : memref<2x512xf32, #tpu.memory_space<vmem>>, vector<2x512xf32>
    %1 = arith.truncf %0 : vector<2x512xf32> to vector<2x512xbf16>
    %c0_1 = arith.constant 0 : index
    %c0_2 = arith.constant 0 : index
    %2 = vector.load %arg2[%c0_1, %c0_2] : memref<512x128xf32, #tpu.memory_space<vmem>>, vector<512x128xf32>
    %3 = arith.truncf %2 : vector<512x128xf32> to vector<512x128xbf16>
    %cst = arith.constant dense<0.000000e+00> : vector<2x128xf32>
    %4 = tpu.matmul %1, %3, %cst {dimension_numbers = #tpu.dot_dimension_numbers<[1], [0], [0], [1], [0, 0, 1, 1], [], []>} : vector<2x512xbf16>, vector<512x128xbf16>, vector<2x128xf32> -> vector<2x128xf32>
    %c0_3 = arith.constant 0 : index
    %c0_4 = arith.constant 0 : index
    %5 = vector.load %arg3[%c0_3, %c0_4] : memref<1x128xf32, #tpu.memory_space<vmem>>, vector<1x128xf32>
    %6 = vector.broadcast %5 : vector<1x128xf32> to vector<2x128xf32>
    %7 = arith.addf %4, %6 : vector<2x128xf32>
    %cst_5 = arith.constant 0.000000e+00 : f32
    %8 = vector.broadcast %cst_5 : f32 to vector<2x128xf32>
    %9 = arith.maximumf %7, %8 : vector<2x128xf32>
    %10 = arith.truncf %9 : vector<2x128xf32> to vector<2x128xbf16>
    %c0_6 = arith.constant 0 : index
    %c0_7 = arith.constant 0 : index
    %11 = vector.load %arg4[%c0_6, %c0_7] : memref<128x128xf32, #tpu.memory_space<vmem>>, vector<128x128xf32>
    %12 = arith.truncf %11 : vector<128x128xf32> to vector<128x128xbf16>
    %cst_8 = arith.constant dense<0.000000e+00> : vector<2x128xf32>
    %13 = tpu.matmul %10, %12, %cst_8 {dimension_numbers = #tpu.dot_dimension_numbers<[1], [0], [0], [1], [0, 0, 1, 1], [], []>} : vector<2x128xbf16>, vector<128x128xbf16>, vector<2x128xf32> -> vector<2x128xf32>
    %c0_9 = arith.constant 0 : index
    %c0_10 = arith.constant 0 : index
    %14 = vector.load %arg5[%c0_9, %c0_10] : memref<1x128xf32, #tpu.memory_space<vmem>>, vector<1x128xf32>
    %15 = vector.broadcast %14 : vector<1x128xf32> to vector<2x128xf32>
    %16 = arith.addf %13, %15 : vector<2x128xf32>
    %cst_11 = arith.constant 0.000000e+00 : f32
    %17 = vector.broadcast %cst_11 : f32 to vector<2x128xf32>
    %18 = arith.maximumf %16, %17 : vector<2x128xf32>
    %19 = arith.truncf %18 : vector<2x128xf32> to vector<2x128xbf16>
    %c0_12 = arith.constant 0 : index
    %c0_13 = arith.constant 0 : index
    %20 = vector.load %arg6[%c0_12, %c0_13] : memref<128x128xf32, #tpu.memory_space<vmem>>, vector<128x128xf32>
    %21 = arith.truncf %20 : vector<128x128xf32> to vector<128x128xbf16>
    %cst_14 = arith.constant dense<0.000000e+00> : vector<2x128xf32>
    %22 = tpu.matmul %19, %21, %cst_14 {dimension_numbers = #tpu.dot_dimension_numbers<[1], [0], [0], [1], [0, 0, 1, 1], [], []>} : vector<2x128xbf16>, vector<128x128xbf16>, vector<2x128xf32> -> vector<2x128xf32>
    %c0_15 = arith.constant 0 : index
    %c0_16 = arith.constant 0 : index
    %23 = vector.load %arg7[%c0_15, %c0_16] : memref<1x128xf32, #tpu.memory_space<vmem>>, vector<1x128xf32>
    %24 = vector.broadcast %23 : vector<1x128xf32> to vector<2x128xf32>
    %25 = arith.addf %22, %24 : vector<2x128xf32>
    %c0_17 = arith.constant 0 : index
    %c0_18 = arith.constant 0 : index
    %26 = vector.load %arg8[%c0_17, %c0_18] : memref<2x128xf32, #tpu.memory_space<vmem>>, vector<2x128xf32>
    tpu.vector_store %arg8[%c0_17, %c0_18], %25 {strides = array<i32>} : memref<2x128xf32, #tpu.memory_space<vmem>>, vector<2x128xf32>,
    return
  }
  func.func @transform_0(%arg0: i32) -> (i32, i32) {
    %c0_i32 = arith.constant 0 : i32
    %c0_i32_0 = arith.constant 0 : i32
    return %arg0, %c0_i32 : i32, i32
  }
  func.func @transform_1(%arg0: i32) -> (i32, i32) {
    %c0_i32 = arith.constant 0 : i32
    %c0_i32_0 = arith.constant 0 : i32
    %c0_i32_1 = arith.constant 0 : i32
    return %c0_i32, %c0_i32_0 : i32, i32
  }
  func.func @transform_2(%arg0: i32) -> (i32, i32) {
    %c0_i32 = arith.constant 0 : i32
    %c0_i32_0 = arith.constant 0 : i32
    %c0_i32_1 = arith.constant 0 : i32
    return %c0_i32, %c0_i32_0 : i32, i32
  }
  func.func @transform_3(%arg0: i32) -> (i32, i32) {
    %c0_i32 = arith.constant 0 : i32
    %c0_i32_0 = arith.constant 0 : i32
    %c0_i32_1 = arith.constant 0 : i32
    return %c0_i32, %c0_i32_0 : i32, i32
  }
  func.func @transform_4(%arg0: i32) -> (i32, i32) {
    %c0_i32 = arith.constant 0 : i32
    %c0_i32_0 = arith.constant 0 : i32
    %c0_i32_1 = arith.constant 0 : i32
    return %c0_i32, %c0_i32_0 : i32, i32
  }
  func.func @transform_5(%arg0: i32) -> (i32, i32) {
    %c0_i32 = arith.constant 0 : i32
    %c0_i32_0 = arith.constant 0 : i32
    %c0_i32_1 = arith.constant 0 : i32
    return %c0_i32, %c0_i32_0 : i32, i32
  }
  func.func @transform_6(%arg0: i32) -> (i32, i32) {
    %c0_i32 = arith.constant 0 : i32
    %c0_i32_0 = arith.constant 0 : i32
    %c0_i32_1 = arith.constant 0 : i32
    return %c0_i32, %c0_i32_0 : i32, i32
  }
  func.func @transform_7(%arg0: i32) -> (i32, i32) {
    %c0_i32 = arith.constant 0 : i32
    %c0_i32_0 = arith.constant 0 : i32
    return %arg0, %c0_i32 : i32, i32
  }
}

</mosaic_0001>

<bundles_post_ra>
// kernel: cnn_cifar_forward.4
= control target key start
LH: loop header
LB: loop body
LE: loop exit
PB: predicated region body
PF: predicated region fallthrough
CT: control target
= control target key end

     0   :  { %s938_s12 = smov 0   ;;  %s1205_s0 = inlined_call_operand.vmem [shape: f32[2,8,384], index: 0, kind: input, shape index: {}]   ;;  %s1206_s1 = inlined_call_operand.vmem [shape: f32[16,200], index: 1, kind: input, shape index: {}]   ;;  %s1207_s2 = inlined_call_operand.vmem [shape: f32[16,1], index: 2, kind: input, shape index: {}]   ;;  %s1208_s3 = inlined_call_operand.vmem [shape: f32[2,16,256], index: 3, kind: output, shape index: {}]  }
   0x1 LB: > { %s716_s13 = sadd.s32 4294967295, %s891_s12   ;;  %p720_p0 = scmp.ge.s32.totalorder %s891_s12, 1  ;;  %s891_s12 = sphi %s938_s12, %s13_s12  }
   0x2   : > { %p137_p1 = scmp.lt.s32.totalorder %s891_s12, 3 }
   0x4   : > { %p138_p2 = pnand %p720_p0, %p137_p1 }
   0x5   : > { %p161_p3 = scmp.lt.s32.totalorder (!%p138_p2), %s716_s13, 1  ;;  %s893_s18 = smov (!%p138_p2), 96  }
   0x6   : > { %141 = sbr.rel (%p138_p2) target bundleno = 402 (0x192), region = 32  ;;  %s894_s19 = smov (!%p138_p2), 127  }
   0x7   : > { %s895_s20 = smov (!%p138_p2), 98   ;;  %s896_s21 = smov (!%p138_p2), 86  }
   0x8   : > { %s897_s22 = smov (!%p138_p2), 97   ;;  %s898_s23 = smov (!%p138_p2), 100  }
   0x9   : > { %s899_s24 = smov (!%p138_p2), 99   ;;  %s900_s25 = smov (!%p138_p2), 110  }
   0xa   : > { %s901_s26 = smov (!%p138_p2), 111   ;;  %s902_s27 = smov (!%p138_p2), 68  }
   0xb   : > { %s1210_s13 = smov (!%p161_p3, %s716_s13), 1  ;;  %s903_s28 = smov 113   ;;  %v184_v8 = vlaneseq  ;;  %vm590_vm6 = vcmask 1043456  }
   0xc   : > { %s729_s14 = smul.u32 24, %s1210_s13  ;;  %s904_s29 = smov 112  }
   0xd   : > { %s905_s30 = smov 69   ;;  %s906_s4 = smov 70   ;;  %v1012_v12 = vand.u32 127, %v184_v8 }
   0xe   : > { %s165_s17 = scalar_lea.vmem %s1205_s0, %s729_s14  ;;  %s907_s5 = smov 114  }
   0xf   : > { %v952_v0 = vld [vmem:[%s165_s17 + $0x8] sm:$0xff]  ;;  %v174_v1 = vld [vmem:[%s165_s17 + $0x10] sm:$0xff]  ;;  %v954_v2 = vld [vmem:[%s165_s17] sm:$0xff]  ;;  %s908_s6 = smov 124   ;;  %s909_s7 = smov 72   ;;  %vm186_vm0 = vcmp.lt.s32.totalorder %v1012_v12, 127 }
  0x10   : > { %v957_v3 = vpack.i.bf16 %v174_v1, %v952_v0  ;;  %v763_v4 = vpack.i.bf16 %v952_v0, %v954_v2  ;;  %s910_s8 = smov 71   ;;  %s911_s9 = smov 125   ;;  %vm355_vm1 = vcmp.lt.s32.totalorder %v1012_v12, 96  ;;  %vm368_vm2 = vcmp.lt.s32.totalorder %v1012_v12, 86 }
  0x11   : > { %s912_s10 = smov 126   ;;  %s913_s11 = smov 82   ;;  %vm485_vm3 = vcmp.lt.s32.totalorder %v1012_v12, 68  ;;  %vm342_vm4 = vcmp.lt.s32.totalorder %v1012_v12, 97  ;;  %vm329_vm5 = vcmp.lt.s32.totalorder %v1012_v12, 98  ;;  %vm303_vm7 = vcmp.lt.s32.totalorder %v1012_v12, 100 }
  0x12   : > { %769 = vrot.lane.b32.xlu1 %v957_v3, %s893_s18  ;;  %764 = vrot.lane.b32.xlu0 %v763_v4, %s894_s19  ;;  %s914_s14 = smov 83   ;;  %s915_s15 = smov 84   ;;  %vm316_vm8 = vcmp.lt.s32.totalorder %v1012_v12, 99  ;;  %vm277_vm9 = vcmp.lt.s32.totalorder %v1012_v12, 111  ;;  %vm290_vm10 = vcmp.lt.s32.totalorder %v1012_v12, 110  ;;  %vm251_vm11 = vcmp.lt.s32.totalorder %v1012_v12, 113 }
  0x13   : > { %779 = vrot.lane.b32.xlu2 %v957_v3, %s895_s20  ;;  %s916_s16 = smov 85   ;;  %vm264_vm12 = vcmp.lt.s32.totalorder %v1012_v12, 112  ;;  %vm459_vm13 = vcmp.lt.s32.totalorder %v1012_v12, 70  ;;  %vm472_vm14 = vcmp.lt.s32.totalorder %v1012_v12, 69  ;;  %vm238_vm15 = vcmp.lt.s32.totalorder %v1012_v12, 114 }
  0x1a   : > { %774 = vrot.lane.b32.xlu1 %v957_v3, %s896_s21  ;;  %182 = vrot.lane.b32.xlu0 %v174_v1, %s894_s19 }
  0x1b   : > { %784 = vrot.lane.b32.xlu2 %v957_v3, %s897_s22 }
  0x22   : > { %362 = vrot.lane.b32.xlu1 %v954_v2, %s896_s21  ;;  %349 = vrot.lane.b32.xlu0 %v954_v2, %s893_s18 }
  0x23   : > { %789 = vrot.lane.b32.xlu2 %v957_v3, %s898_s23 }
  0x2a   : > { %323 = vrot.lane.b32.xlu1 %v954_v2, %s895_s20  ;;  %794 = vrot.lane.b32.xlu0 %v957_v3, %s899_s24 }
  0x2b   : > { %336 = vrot.lane.b32.xlu2 %v954_v2, %s897_s22 }
  0x32   : > { %804 = vrot.lane.b32.xlu1 %v957_v3, %s900_s25  ;;  %799 = vrot.lane.b32.xlu0 %v957_v3, %s901_s26 }
  0x33   : > { %809 = vrot.lane.b32.xlu2 %v957_v3, %s902_s27 }
  0x3a   : > { %310 = vrot.lane.b32.xlu1 %v954_v2, %s899_s24  ;;  %297 = vrot.lane.b32.xlu0 %v954_v2, %s898_s23 }
  0x3b   : > { %814 = vrot.lane.b32.xlu2 %v957_v3, %s903_s28 }
  0x42   : > { %271 = vrot.lane.b32.xlu1 %v954_v2, %s901_s26  ;;  %819 = vrot.lane.b32.xlu0 %v957_v3, %s904_s29 }
  0x43   : > { %284 = vrot.lane.b32.xlu2 %v954_v2, %s900_s25 }
  0x4a   : > { %829 = vrot.lane.b32.xlu1 %v957_v3, %s905_s30  ;;  %824 = vrot.lane.b32.xlu0 %v957_v3, %s906_s4 }
  0x4b   : > { %479 = vrot.lane.b32.xlu2 %v954_v2, %s902_s27 }
  0x52   : > { %839 = vrot.lane.b32.xlu1 %v957_v3, %s907_s5  ;;  %834 = vrot.lane.b32.xlu0 %v957_v3, %s908_s6 }
  0x53   : > { %245 = vrot.lane.b32.xlu2 %v954_v2, %s903_s28 }
  0x5a   : > { %844 = vrot.lane.b32.xlu1 %v957_v3, %s909_s7  ;;  %258 = vrot.lane.b32.xlu0 %v954_v2, %s904_s29  ;;  %s728_s29 = sshll.u32 %s1210_s13, 5 }
  0x5b   : > { %849 = vrot.lane.b32.xlu2 %v957_v3, %s910_s8 }
  0x62   : > { %859 = vrot.lane.b32.xlu1 %v957_v3, %s911_s9  ;;  %854 = vrot.lane.b32.xlu0 %v957_v3, %s912_s10 }
  0x63   : > { %453 = vrot.lane.b32.xlu2 %v954_v2, %s906_s4 }
  0x6a   : > { %219 = vrot.lane.b32.xlu1 %v954_v2, %s908_s6  ;;  %466 = vrot.lane.b32.xlu0 %v954_v2, %s905_s30 }
  0x6b   : > { %232 = vrot.lane.b32.xlu2 %v954_v2, %s907_s5  ;;  %s170_s5 = scalar_lea.vmem %s1208_s3, %s728_s29 }
  0x6d   : > { %v995_v5 = vpop.permute.xlu2 %779 }
  0x6e   : > { %v782_v13 = vunpack.i.h.bf16 %v995_v5  ;;  %v781_v17 = vunpack.i.l.bf16 %v995_v5 }
  0x70   : > { %v330_v32 = vsel %vm329_vm5, %v781_v17, %v782_v13 }
  0x72   : > { %869 = vrot.lane.b32.xlu1 %v957_v3, %s913_s11  ;;  %864 = vrot.lane.b32.xlu0 %v957_v3, %s914_s14 }
  0x73   : > { %427 = vrot.lane.b32.xlu2 %v954_v2, %s909_s7 }
  0x75   : > { %v1000_v6 = vpop.permute.xlu2 %784 }
  0x76   : > { %v787_v18 = vunpack.i.h.bf16 %v1000_v6  ;;  %v786_v19 = vunpack.i.l.bf16 %v1000_v6 }
  0x78   : > { %v343_v33 = vsel %vm342_vm4, %v786_v19, %v787_v18 }
  0x79   : > { %v561_v38 = vpack.c.bf16 %v343_v33, %v330_v32 }
  0x7a   : > { %193 = vrot.lane.b32.xlu1 %v954_v2, %s912_s10  ;;  %440 = vrot.lane.b32.xlu0 %v954_v2, %s910_s8 }
  0x7b   : > { %206 = vrot.lane.b32.xlu2 %v954_v2, %s911_s9 }
  0x7d   : > { %v1005_v7 = vpop.permute.xlu2 %789 }
  0x7e   : > { %v792_v43 = vunpack.i.h.bf16 %v1005_v7  ;;  %v791_v44 = vunpack.i.l.bf16 %v1005_v7 }
  0x80   : > { %v304_v53 = vsel %vm303_vm7, %v791_v44, %v792_v43 }
  0x82   : > { %879 = vrot.lane.b32.xlu1 %v957_v3, %s915_s15  ;;  %874 = vrot.lane.b32.xlu0 %v957_v3, %s916_s16 }
  0x83   : > { %401 = vrot.lane.b32.xlu2 %v954_v2, %s914_s14 }
  0x84   : > { %v770_v9 = vpop.permute.xlu1 %769  ;;  %v1010_v10 = vpop.permute.xlu0 %764 }
  0x85   : > { %v337_v11 = vpop.permute.xlu2 %336  ;;  %v772_v14 = vunpack.i.h.bf16 %v770_v9  ;;  %v771_v15 = vunpack.i.l.bf16 %v770_v9  ;;  %v767_v16 = vunpack.i.h.bf16 %v1010_v10 }
  0x86   : > { %v344_v47 = vsel %vm342_vm4, %v337_v11, %v786_v19  ;;  %vm212_vm4 = vcmp.lt.s32.totalorder %v1012_v12, 125 }
  0x87   : > { %v356_v28 = vsel %vm355_vm1, %v771_v15, %v772_v14 }
  0x8a   : > { %375 = vrot.lane.b32.xlu1 %v954_v2, %s916_s16  ;;  %414 = vrot.lane.b32.xlu0 %v954_v2, %s913_s11 }
  0x8b   : > { %388 = vrot.lane.b32.xlu2 %v954_v2, %s915_s15 }
  0x8c   : > { %v775_v20 = vpop.permute.xlu1 %774  ;;  %v183_v21 = vpop.permute.xlu0 %182 }
  0x8d   : > { %v777_v22 = vunpack.i.h.bf16 %v775_v20  ;;  %v776_v23 = vunpack.i.l.bf16 %v775_v20  ;;  %v1029_v24 = vsel %vm186_vm0, %v767_v16, %v183_v21  ;;  %v810_v25 = vpop.permute.xlu2 %809 }
  0x8e   : > { %v812_v26 = vunpack.i.h.bf16 %v810_v25  ;;  %v811_v27 = vunpack.i.l.bf16 %v810_v25 }
  0x8f   : > { %v369_v29 = vsel %vm368_vm2, %v776_v23, %v777_v22 }
  0x90   : > { %v563_v30 = vpack.c.bf16 %v369_v29, %v356_v28  ;;  %v486_v31 = vsel %vm485_vm3, %v811_v27, %v812_v26 }
  0x91   : > { %v573_v34 = vpack.c.bf16 %v486_v31, %v486_v31 }
  0x92   : > { %625 = vmatpush.bf16.msra.mxu2 %v563_v30 }
  0x93   : > { %v595_v35 = vsel %vm590_vm6, %v573_v34, 0 }
  0x94   : > { %v363_v36 = vpop.permute.xlu1 %362  ;;  %v350_v37 = vpop.permute.xlu0 %349  ;;  %642 = vmatpush.bf16.msra.mxu3 %v595_v35 }
  0x95   : > { %v1045_v39 = vpop.permute.xlu2 %814  ;;  %v357_v40 = vsel %vm355_vm1, %v350_v37, %v771_v15  ;;  %v370_v41 = vsel %vm368_vm2, %v363_v36, %v776_v23  ;;  %vm225_vm1 = vcmp.lt.s32.totalorder %v1012_v12, 124  ;;  %vm446_vm2 = vcmp.lt.s32.totalorder %v1012_v12, 71 }
  0x96   : > { %626 = vmatpush.bf16.msra.mxu2 %v561_v38  ;;  %v562_v42 = vpack.c.bf16 %v370_v41, %v357_v40  ;;  %v817_v14 = vunpack.i.h.bf16 %v1045_v39  ;;  %v816_v15 = vunpack.i.l.bf16 %v1045_v39 }
  0x98   : > { %597 = vmatpush.bf16.msra.mxu0 %v562_v42  ;;  %v252_v25 = vsel %vm251_vm11, %v816_v15, %v817_v14 }
  0x9c   : > { %v324_v45 = vpop.permute.xlu1 %323  ;;  %v795_v46 = vpop.permute.xlu0 %794 }
  0x9d   : > { %v331_v48 = vsel %vm329_vm5, %v324_v45, %v781_v17  ;;  %v797_v49 = vunpack.i.h.bf16 %v795_v46  ;;  %v796_v50 = vunpack.i.l.bf16 %v795_v46  ;;  %v285_v51 = vpop.permute.xlu2 %284  ;;  %vm199_vm5 = vcmp.lt.s32.totalorder %v1012_v12, 126 }
  0x9e   : > { %v560_v52 = vpack.c.bf16 %v344_v47, %v331_v48 }
  0x9f   : > { %v317_v54 = vsel %vm316_vm8, %v796_v50, %v797_v49 }
  0xa0   : > { %598 = vmatpush.bf16.msra.mxu0 %v560_v52  ;;  %v559_v55 = vpack.c.bf16 %v317_v54, %v304_v53 }
  0xa2   : > { %627 = vmatpush.bf16.msra.mxu2 %v559_v55 }
  0xa4   : > { %v805_v56 = vpop.permute.xlu1 %804  ;;  %v800_v57 = vpop.permute.xlu0 %799 }
  0xa5   : > { %v807_v58 = vunpack.i.h.bf16 %v805_v56  ;;  %v806_v59 = vunpack.i.l.bf16 %v805_v56  ;;  %v802_v60 = vunpack.i.h.bf16 %v800_v57  ;;  %v801_v61 = vunpack.i.l.bf16 %v800_v57  ;;  %v480_v62 = vpop.permute.xlu2 %479 }
  0xa6   : > { %v487_v63 = vsel %vm485_vm3, %v480_v62, %v811_v27  ;;  %vm433_vm3 = vcmp.lt.s32.totalorder %v1012_v12, 72 }
  0xa7   : > { %v278_v1 = vsel %vm277_vm9, %v801_v61, %v802_v60  ;;  %v291_v3 = vsel %vm290_vm10, %v806_v59, %v807_v58  ;;  %v572_v4 = vpack.c.bf16 %v487_v63, %v487_v63  ;;  %v292_v22 = vsel %vm290_vm10, %v285_v51, %v806_v59 }
  0xa8   : > { %v557_v5 = vpack.c.bf16 %v291_v3, %v278_v1 }
  0xa9   : > { %v592_v6 = vsel %vm590_vm6, %v572_v4, 0  ;;  %vm407_vm6 = vcmp.lt.s32.totalorder %v1012_v12, 83 }
  0xaa   : > { %628 = vmatpush.bf16.msra.mxu2 %v557_v5  ;;  %614 = vmatpush.bf16.msra.mxu1 %v592_v6 }
  0xac   : > { %v311_v7 = vpop.permute.xlu1 %310  ;;  %v298_v8 = vpop.permute.xlu0 %297 }
  0xad   : > { %v318_v9 = vsel %vm316_vm8, %v311_v7, %v796_v50  ;;  %v305_v11 = vsel %vm303_vm7, %v298_v8, %v791_v44  ;;  %v246_v28 = vpop.permute.xlu2 %245  ;;  %vm420_vm7 = vcmp.lt.s32.totalorder %v1012_v12, 82  ;;  %vm394_vm8 = vcmp.lt.s32.totalorder %v1012_v12, 84 }
  0xae   : > { %v558_v13 = vpack.c.bf16 %v318_v9, %v305_v11  ;;  %v253_v50 = vsel %vm251_vm11, %v246_v28, %v816_v15  ;;  %v492_v9 = vld [vmem:[%s1206_s1] sm:$0xff]  ;;  %v494_v11 = vld [vmem:[%s1206_s1 + $0x10] sm:$0xff] }
  0xb0   : > { %599 = vmatpush.bf16.msra.mxu0 %v558_v13 }
  0xb4   : > { %v272_v17 = vpop.permute.xlu1 %271  ;;  %v820_v18 = vpop.permute.xlu0 %819 }
  0xb5   : > { %v279_v19 = vsel %vm277_vm9, %v272_v17, %v801_v61  ;;  %v822_v20 = vunpack.i.h.bf16 %v820_v18  ;;  %v821_v21 = vunpack.i.l.bf16 %v820_v18  ;;  %v1098_v38 = vpop.permute.xlu2 %849  ;;  %v549_v17 = vpack.c.bf16 %v1029_v24, %v952_v0 }
  0xb6   : > { %v556_v23 = vpack.c.bf16 %v292_v22, %v279_v19  ;;  %v852_v48 = vunpack.i.h.bf16 %v1098_v38  ;;  %v851_v49 = vunpack.i.l.bf16 %v1098_v38  ;;  %vm381_vm9 = vcmp.lt.s32.totalorder %v1012_v12, 85 }
  0xb7   : > { %v265_v26 = vsel %vm264_vm12, %v821_v21, %v822_v20 }
  0xb8   : > { %600 = vmatpush.bf16.msra.mxu0 %v556_v23  ;;  %v555_v27 = vpack.c.bf16 %v265_v26, %v252_v25  ;;  %v447_v56 = vsel %vm446_vm2, %v851_v49, %v852_v48 }
  0xba   : > { %629 = vmatpush.bf16.msra.mxu2 %v555_v27 }
  0xbc   : > { %v1088_v29 = vpop.permute.xlu1 %829  ;;  %v825_v30 = vpop.permute.xlu0 %824 }
  0xbd   : > { %v832_v31 = vunpack.i.h.bf16 %v1088_v29  ;;  %v831_v32 = vunpack.i.l.bf16 %v1088_v29  ;;  %v827_v33 = vunpack.i.h.bf16 %v825_v30  ;;  %v826_v34 = vunpack.i.l.bf16 %v825_v30  ;;  %v454_v57 = vpop.permute.xlu2 %453 }
  0xbf   : > { %v460_v35 = vsel %vm459_vm13, %v826_v34, %v827_v33  ;;  %v473_v36 = vsel %vm472_vm14, %v831_v32, %v832_v31  ;;  %v461_v13 = vsel %vm459_vm13, %v454_v57, %v826_v34  ;;  %v574_v33 = vld [vmem:[%s1207_s2] sm:$0xff] }
  0xc0   : > { %v571_v37 = vpack.c.bf16 %v473_v36, %v460_v35  ;;  %v917_v35 = vmov 0  }
  0xc1   : > { %884 = vset.pattern.permute.xlu1 %v917_v35  ;;  %883 = vset.pattern.permute.xlu0 %v917_v35 }
  0xc2   : > { %643 = vmatpush.bf16.msra.mxu3 %v571_v37  ;;  %578 = vperm.xlu0 %883, %v574_v33   ;;  %v766_v37 = vunpack.i.l.bf16 %v1010_v10  ;;  %v493_v10 = vld [vmem:[%s1206_s1 + $0x8] sm:$0xff] }
  0xc4   : > { %v840_v39 = vpop.permute.xlu1 %839  ;;  %v835_v40 = vpop.permute.xlu0 %834 }
  0xc5   : > { %v842_v41 = vunpack.i.h.bf16 %v840_v39  ;;  %v841_v42 = vunpack.i.l.bf16 %v840_v39  ;;  %v837_v43 = vunpack.i.h.bf16 %v835_v40  ;;  %v836_v44 = vunpack.i.l.bf16 %v835_v40  ;;  %v233_v5 = vpop.permute.xlu2 %232 }
  0xc7   : > { %v226_v45 = vsel %vm225_vm1, %v836_v44, %v837_v43  ;;  %v239_v46 = vsel %vm238_vm15, %v841_v42, %v842_v41  ;;  %v240_v18 = vsel %vm238_vm15, %v233_v5, %v841_v42 }
  0xc8   : > { %v553_v47 = vpack.c.bf16 %v239_v46, %v226_v45 }
  0xca   : > { %630 = vmatpush.bf16.msra.mxu2 %v553_v47  ;;  %v188_v47 = vsel %vm186_vm0, %v766_v37, %v767_v16  ;;  %vm586_vm0 = vcmask 588800  }
  0xcb   : > { %v548_v48 = vpack.c.bf16 %v188_v47, %v954_v2  ;;  %v495_v2 = vld [vmem:[%s1206_s1 + $0x18] sm:$0xff] }
  0xcc   : > { %v1111_v51 = vpop.permute.xlu1 %844  ;;  %v259_v52 = vpop.permute.xlu0 %258  ;;  %v497_v57 = vpack.c.bf16 %v495_v2, %v493_v10 }
  0xcd   : > { %v847_v53 = vunpack.i.h.bf16 %v1111_v51  ;;  %v846_v54 = vunpack.i.l.bf16 %v1111_v51  ;;  %v266_v55 = vsel %vm264_vm12, %v259_v52, %v821_v21  ;;  %v496_v21 = vpack.c.bf16 %v494_v11, %v492_v9  ;;  %v428_v25 = vpop.permute.xlu2 %427 }
  0xce   : > { %v554_v58 = vpack.c.bf16 %v266_v55, %v253_v50 }
  0xcf   : > { %v434_v59 = vsel %vm433_vm3, %v846_v54, %v847_v53  ;;  %v435_v41 = vsel %vm433_vm3, %v428_v25, %v846_v54 }
  0xd0   : > { %601 = vmatpush.bf16.msra.mxu0 %v554_v58  ;;  %v569_v60 = vpack.c.bf16 %v447_v56, %v434_v59 }
  0xd2   : > { %644 = vmatpush.bf16.msra.mxu3 %v569_v60 }
  0xd4   : > { %v860_v61 = vpop.permute.xlu1 %859  ;;  %v855_v62 = vpop.permute.xlu0 %854 }
  0xd5   : > { %v862_v63 = vunpack.i.h.bf16 %v860_v61  ;;  %v861_v1 = vunpack.i.l.bf16 %v860_v61  ;;  %v857_v3 = vunpack.i.h.bf16 %v855_v62  ;;  %v856_v4 = vunpack.i.l.bf16 %v855_v62  ;;  %v207_v36 = vpop.permute.xlu2 %206 }
  0xd7   : > { %v200_v6 = vsel %vm199_vm5, %v856_v4, %v857_v3  ;;  %v213_v7 = vsel %vm212_vm4, %v861_v1, %v862_v63  ;;  %v214_v42 = vsel %vm212_vm4, %v207_v36, %v861_v1 }
  0xd8   : > { %v551_v8 = vpack.c.bf16 %v213_v7, %v200_v6 }
  0xda   : > { %631 = vmatpush.bf16.msra.mxu2 %v551_v8 }
  0xdc   : > { %v220_v14 = vpop.permute.xlu1 %219  ;;  %v467_v15 = vpop.permute.xlu0 %466 }
  0xdd   : > { %v227_v19 = vsel %vm225_vm1, %v220_v14, %v836_v44  ;;  %v474_v20 = vsel %vm472_vm14, %v467_v15, %v831_v32  ;;  %v575_v32 = vld [vmem:[%s1207_s2 + $0x8] sm:$0xff]  ;;  %v402_v54 = vpop.permute.xlu2 %401 }
  0xde   : > { %632 = vmatpush.bf16.msra.mxu2 %v549_v17  ;;  %v552_v22 = vpack.c.bf16 %v240_v18, %v227_v19  ;;  %v570_v23 = vpack.c.bf16 %v474_v20, %v461_v13  ;;  %583 = vperm.xlu1 %884, %v575_v32  }
  0xe0   : > { %602 = vmatpush.bf16.msra.mxu0 %v552_v22  ;;  %615 = vmatpush.bf16.msra.mxu1 %v570_v23 }
  0xe1   : > { %633 = vmatmul.bf16.vlgmr.msra.gmra.mxu2 %v496_v21 }
  0xe4   : > { %v870_v26 = vpop.permute.xlu1 %869  ;;  %v865_v27 = vpop.permute.xlu0 %864 }
  0xe5   : > { %v872_v0 = vunpack.i.h.bf16 %v870_v26  ;;  %v871_v24 = vunpack.i.l.bf16 %v870_v26  ;;  %v867_v28 = vunpack.i.h.bf16 %v865_v27  ;;  %v866_v29 = vunpack.i.l.bf16 %v865_v27  ;;  %v389_v62 = vpop.permute.xlu2 %388 }
  0xe7   : > { %v408_v30 = vsel %vm407_vm6, %v866_v29, %v867_v28  ;;  %v421_v31 = vsel %vm420_vm7, %v871_v24, %v872_v0  ;;  %v409_v60 = vsel %vm407_vm6, %v402_v54, %v866_v29 }
  0xe8   : > { %v567_v34 = vpack.c.bf16 %v421_v31, %v408_v30 }
  0xea   : > { %645 = vmatpush.bf16.msra.mxu3 %v567_v34 }
  0xec   : > { %v194_v39 = vpop.permute.xlu1 %193  ;;  %v441_v40 = vpop.permute.xlu0 %440 }
  0xed   : > { %v201_v43 = vsel %vm199_vm5, %v194_v39, %v856_v4  ;;  %v448_v44 = vsel %vm446_vm2, %v441_v40, %v851_v49 }
  0xee   : > { %v550_v45 = vpack.c.bf16 %v214_v42, %v201_v43  ;;  %v568_v46 = vpack.c.bf16 %v448_v44, %v435_v41 }
  0xf0   : > { %603 = vmatpush.bf16.msra.mxu0 %v550_v45  ;;  %616 = vmatpush.bf16.msra.mxu1 %v568_v46 }
  0xf4   : > { %v880_v50 = vpop.permute.xlu1 %879  ;;  %v875_v51 = vpop.permute.xlu0 %874  ;;  %604 = vmatpush.bf16.msra.mxu0 %v548_v48 }
  0xf5   : > { %v882_v38 = vunpack.i.h.bf16 %v880_v50  ;;  %v881_v49 = vunpack.i.l.bf16 %v880_v50  ;;  %v877_v52 = vunpack.i.h.bf16 %v875_v51  ;;  %v876_v53 = vunpack.i.l.bf16 %v875_v51 }
  0xf7   : > { %v382_v16 = vsel %vm381_vm9, %v876_v53, %v877_v52  ;;  %v395_v55 = vsel %vm394_vm8, %v881_v49, %v882_v38  ;;  %605 = vmatmul.bf16.vlgmr.msra.gmra.mxu0 %v496_v21  ;;  %v396_v3 = vsel %vm394_vm8, %v389_v62, %v881_v49 }
  0xf8   : > { %v565_v56 = vpack.c.bf16 %v395_v55, %v382_v16 }
  0xfa   : > { %646 = vmatpush.bf16.msra.mxu3 %v565_v56 }
  0xfc   : > { %v376_v58 = vpop.permute.xlu1 %375  ;;  %v415_v59 = vpop.permute.xlu0 %414 }
  0xfd   : > { %v422_v61 = vsel %vm420_vm7, %v415_v59, %v871_v24  ;;  %725 = vmatmul.msk.bf16.vlgmr.msra.gmra.mxu3 %vm586_vm0, %v497_v57  ;;  %v383_v1 = vsel %vm381_vm9, %v376_v58, %v876_v53 }
  0xfe   : > { %v566_v63 = vpack.c.bf16 %v422_v61, %v409_v60  ;;  %v564_v4 = vpack.c.bf16 %v396_v3, %v383_v1 }
 0x100   : > { %617 = vmatpush.bf16.msra.mxu1 %v566_v63 }
 0x104   : > { %618 = vmatpush.bf16.msra.mxu1 %v564_v4 }
 0x107   : > { %724 = vmatmul.msk.bf16.vlgmr.msra.gmra.mxu1 %vm586_vm0, %v497_v57 }
 0x134   : > { %v579_v6 = vpop.permute.xlu0 %578 }
 0x150   : > { %v584_v14 = vpop.permute.xlu1 %583 }
 0x164   : > { %v634_v5 = vpop.f32.mrf.mxu2 }
 0x165   : > { %v635_v7 = vadd.f32 %v634_v5, %v579_v6 }
 0x16c   : > { %v636_v17 = vpop.f32.mrf.mxu2 }
 0x16d   : > { %v637_v19 = vadd.f32 %v636_v17, %v584_v14 }
 0x174   : > { %v606_v8 = vpop.f32.mrf.mxu0 }
 0x175   : > { %v607_v11 = vadd.f32 %v606_v8, %v579_v6 }
 0x17c   : > { %v608_v21 = vpop.f32.mrf.mxu0 }
 0x17d   : > { %v609_v25 = vadd.f32 %v608_v21, %v584_v14 }
 0x180   : > { %v648_v9 = vpop.f32.mrf.mxu3 }
 0x181   : > { %v649_v13 = vadd.f32 %v648_v9, %v635_v7 }
 0x183   : > { %v654_v15 = vmax.f32 %v649_v13, 0.0 }
 0x184   : > { %v620_v12 = vpop.f32.mrf.mxu1 }
 0x185   : > { %658 = vst [vmem:[%s170_s5 + $0x8] sm:$0xff] %v654_v15  ;;  %v621_v18 = vadd.f32 %v620_v12, %v607_v11 }
 0x187   : > { %v653_v20 = vmax.f32 %v621_v18, 0.0 }
 0x188   : > { %v650_v22 = vpop.f32.mrf.mxu3 }
 0x189   : > { %657 = vst [vmem:[%s170_s5] sm:$0xff] %v653_v20  ;;  %v651_v23 = vadd.f32 %v650_v22, %v637_v19 }
 0x18b   : > { %v656_v26 = vmax.f32 %v651_v23, 0.0 }
 0x18c   : > { %v622_v27 = vpop.f32.mrf.mxu1 }
 0x18d   : > { %660 = vst [vmem:[%s170_s5 + $0x18] sm:$0xff] %v656_v26  ;;  %v623_v0 = vadd.f32 %v622_v27, %v609_v25 }
 0x18f   : > { %v655_v24 = vmax.f32 %v623_v0, 0.0 }
 0x191   : > { %659 = vst [vmem:[%s170_s5 + $0x10] sm:$0xff] %v655_v24 }
 0x192 PF: > { %s13_s12 = sadd.s32 1, %s891_s12  }
 0x193   : > { %p10_p4 = scmp.ge.s32.totalorder %s13_s12, 4  }
 0x195   :  { %12 = sbr.rel (!%p10_p4) target bundleno = 1 (0x1), region = 62 }

// kernel: cnn_cifar_forward.3
= control target key start
LH: loop header
LB: loop body
LE: loop exit
PB: predicated region body
PF: predicated region fallthrough
CT: control target
= control target key end

     0   :  { %s1975_s12 = smov 0   ;;  %s3178_s0 = inlined_call_operand.vmem [shape: f32[2,8,1152], index: 0, kind: input, shape index: {}]   ;;  %s3179_s1 = inlined_call_operand.vmem [shape: f32[8,200], index: 1, kind: input, shape index: {}]   ;;  %s3180_s2 = inlined_call_operand.vmem [shape: f32[8,1], index: 2, kind: input, shape index: {}]   ;;  %s3181_s3 = inlined_call_operand.vmem [shape: f32[2,8,896], index: 3, kind: output, shape index: {}]  }
   0x1 LB: > { %s1493_s13 = sadd.s32 4294967295, %s1933_s12   ;;  %p1497_p0 = scmp.ge.s32.totalorder %s1933_s12, 1  ;;  %s1933_s12 = sphi %s1975_s12, %s13_s12  }
   0x2   : > { %p137_p1 = scmp.lt.s32.totalorder %s1933_s12, 3 }
   0x4   : > { %p138_p2 = pnand %p1497_p0, %p137_p1 }
   0x6   : > { %141 = sbr.rel (%p138_p2) target bundleno = 524 (0x20c), region = 32 }
   0xb   : > { %p161_p3 = scmp.lt.s32.totalorder %s1493_s13, 1  ;;  %s1935_s18 = smov 127   ;;  %v208_v15 = vlaneseq  ;;  %vm1220_vm3 = vcmask 1043456  }
   0xc   : > { %s1936_s19 = smov 126   ;;  %s1937_s20 = smov 125  }
   0xd   : > { %s3329_s13 = smov (!%p161_p3, %s1493_s13), 1  ;;  %s1938_s21 = smov 124   ;;  %v2063_v19 = vand.u32 127, %v208_v15 }
   0xe   : > { %s1509_s14 = smul.u32 72, %s3329_s13  ;;  %s1939_s22 = smov 96  }
   0xf   : > { %s1940_s23 = smov 95   ;;  %s1941_s24 = smov 94   ;;  %vm247_vm0 = vcmp.lt.s32.totalorder %v2063_v19, 126  ;;  %vm210_vm1 = vcmp.lt.s32.totalorder %v2063_v19, 127  ;;  %vm321_vm2 = vcmp.lt.s32.totalorder %v2063_v19, 124  ;;  %vm284_vm4 = vcmp.lt.s32.totalorder %v2063_v19, 125 }
  0x10   : > { %s1989_s17 = scalar_lea.vmem %s3178_s0, %s1509_s14  ;;  %s1942_s25 = smov 93   ;;  %vm358_vm5 = vcmp.lt.s32.totalorder %v2063_v19, 96  ;;  %vm432_vm6 = vcmp.lt.s32.totalorder %v2063_v19, 94  ;;  %vm395_vm7 = vcmp.lt.s32.totalorder %v2063_v19, 95  ;;  %vm469_vm8 = vcmp.lt.s32.totalorder %v2063_v19, 93 }
  0x11   : > { %v180_v0 = vld [vmem:[%s1989_s17 + $0x40] sm:$0xff]  ;;  %v1996_v2 = vld [vmem:[%s1989_s17 + $0x8] sm:$0xff]  ;;  %v2008_v7 = vld [vmem:[%s1989_s17 + $0x10] sm:$0xff]  ;;  %s1943_s26 = smov 92   ;;  %s1944_s27 = smov 60   ;;  %vm506_vm9 = vcmp.lt.s32.totalorder %v2063_v19, 92 }
  0x12   : > { %v1993_v1 = vld [vmem:[%s1989_s17] sm:$0xff]  ;;  %206 = vrot.lane.b32.xlu2 %v180_v0, %s1935_s18  ;;  %v177_v5 = vld [vmem:[%s1989_s17 + $0x28] sm:$0xff]  ;;  %v2011_v8 = vld [vmem:[%s1989_s17 + $0x18] sm:$0xff]  ;;  %v2059_v16 = vpack.i.bf16 %v2008_v7, %v1996_v2  ;;  %s1945_s28 = smov 64   ;;  %s1946_s29 = smov 61   ;;  %vm691_vm10 = vcmp.lt.s32.totalorder %v2063_v19, 60 }
  0x13   : > { %v176_v3 = vld [vmem:[%s1989_s17 + $0x20] sm:$0xff]  ;;  %v2001_v4 = vpack.i.bf16 %v1996_v2, %v1993_v1  ;;  %v178_v9 = vld [vmem:[%s1989_s17 + $0x30] sm:$0xff]  ;;  %v179_v10 = vld [vmem:[%s1989_s17 + $0x38] sm:$0xff]  ;;  %v2018_v11 = vpack.i.bf16 %v2011_v8, %v2008_v7  ;;  %s1947_s30 = smov 32   ;;  %s1948_s4 = smov 62   ;;  %v2100_v30 = vpack.i.bf16 %v2011_v8, %v1993_v1  ;;  %vm728_vm11 = vcmp.lt.s32.totalorder %v2063_v19, 32 }
  0x14   : > { %v2004_v6 = vpack.i.bf16 %v177_v5, %v176_v3  ;;  %v2021_v12 = vpack.i.bf16 %v179_v10, %v178_v9  ;;  %s1949_s5 = smov 28   ;;  %s1950_s6 = smov 63   ;;  %vm617_vm12 = vcmp.lt.s32.totalorder %v2063_v19, 62  ;;  %vm654_vm13 = vcmp.lt.s32.totalorder %v2063_v19, 61 }
  0x15   : > { %1540 = vrot.lane.b32.xlu0 %v2001_v4, %s1935_s18  ;;  %s1951_s7 = smov 29   ;;  %s1952_s8 = smov 31   ;;  %vm876_vm14 = vcmp.lt.s32.totalorder %v2063_v19, 28  ;;  %vm543_vm15 = vcmp.lt.s32.totalorder %v2063_v19, 64 }
  0x16   : > { %1550 = vrot.lane.b32.xlu1 %v2004_v6, %s1935_s18  ;;  %s1953_s9 = smov 30  }
  0x1a   : > { %1560 = vrot.lane.b32.xlu2 %v2001_v4, %s1936_s19 }
  0x1d   : > { %1545 = vrot.lane.b32.xlu0 %v2018_v11, %s1935_s18 }
  0x1e   : > { %1555 = vrot.lane.b32.xlu1 %v2021_v12, %s1935_s18 }
  0x22   : > { %1575 = vrot.lane.b32.xlu2 %v2021_v12, %s1936_s19 }
  0x25   : > { %1565 = vrot.lane.b32.xlu0 %v2018_v11, %s1936_s19 }
  0x26   : > { %1570 = vrot.lane.b32.xlu1 %v2004_v6, %s1936_s19 }
  0x2a   : > { %1585 = vrot.lane.b32.xlu2 %v2018_v11, %s1937_s20 }
  0x2d   : > { %245 = vrot.lane.b32.xlu0 %v180_v0, %s1936_s19 }
  0x2e   : > { %1580 = vrot.lane.b32.xlu1 %v2001_v4, %s1937_s20 }
  0x32   : > { %282 = vrot.lane.b32.xlu2 %v180_v0, %s1937_s20 }
  0x35   : > { %1590 = vrot.lane.b32.xlu0 %v2004_v6, %s1937_s20 }
  0x36   : > { %1595 = vrot.lane.b32.xlu1 %v2021_v12, %s1937_s20 }
  0x3a   : > { %1610 = vrot.lane.b32.xlu2 %v2004_v6, %s1938_s21 }
  0x3d   : > { %1600 = vrot.lane.b32.xlu0 %v2001_v4, %s1938_s21 }
  0x3e   : > { %1605 = vrot.lane.b32.xlu1 %v2018_v11, %s1938_s21 }
  0x42   : > { %1620 = vrot.lane.b32.xlu2 %v2001_v4, %s1939_s22 }
  0x45   : > { %1615 = vrot.lane.b32.xlu0 %v2021_v12, %s1938_s21 }
  0x46   : > { %319 = vrot.lane.b32.xlu1 %v180_v0, %s1938_s21 }
  0x4a   : > { %1635 = vrot.lane.b32.xlu2 %v2021_v12, %s1939_s22 }
  0x4d   : > { %1625 = vrot.lane.b32.xlu0 %v2018_v11, %s1939_s22 }
  0x4e   : > { %1630 = vrot.lane.b32.xlu1 %v2004_v6, %s1939_s22 }
  0x52   : > { %1650 = vrot.lane.b32.xlu2 %v2004_v6, %s1940_s23 }
  0x55   : > { %1640 = vrot.lane.b32.xlu0 %v2001_v4, %s1940_s23 }
  0x56   : > { %1645 = vrot.lane.b32.xlu1 %v2018_v11, %s1940_s23 }
  0x5a   : > { %1665 = vrot.lane.b32.xlu2 %v2018_v11, %s1941_s24 }
  0x5d   : > { %1655 = vrot.lane.b32.xlu0 %v2021_v12, %s1940_s23 }
  0x5e   : > { %1660 = vrot.lane.b32.xlu1 %v2001_v4, %s1941_s24 }
  0x62   : > { %1680 = vrot.lane.b32.xlu2 %v2001_v4, %s1942_s25 }
  0x65   : > { %1670 = vrot.lane.b32.xlu0 %v2004_v6, %s1941_s24 }
  0x66   : > { %1675 = vrot.lane.b32.xlu1 %v2021_v12, %s1941_s24 }
  0x6a   : > { %1695 = vrot.lane.b32.xlu2 %v2021_v12, %s1942_s25 }
  0x6c   : > { %v207_v13 = vpop.permute.xlu2 %206 }
  0x6d   : > { %1685 = vrot.lane.b32.xlu0 %v2018_v11, %s1942_s25 }
  0x6e   : > { %1690 = vrot.lane.b32.xlu1 %v2004_v6, %s1942_s25 }
  0x72   : > { %1710 = vrot.lane.b32.xlu2 %v2004_v6, %s1943_s26 }
  0x74   : > { %v2053_v14 = vpop.permute.xlu2 %1560 }
  0x75   : > { %1700 = vrot.lane.b32.xlu0 %v2001_v4, %s1943_s26  ;;  %v1563_v17 = vunpack.i.h.bf16 %v2053_v14  ;;  %v1562_v18 = vunpack.i.l.bf16 %v2053_v14 }
  0x76   : > { %1705 = vrot.lane.b32.xlu1 %v2018_v11, %s1943_s26 }
  0x77   : > { %v2072_v20 = vsel %vm247_vm0, %v1562_v18, %v1563_v17 }
  0x7a   : > { %1725 = vrot.lane.b32.xlu2 %v2059_v16, %s1944_s27 }
  0x7c   : > { %v2074_v21 = vpop.permute.xlu2 %1575 }
  0x7d   : > { %1715 = vrot.lane.b32.xlu0 %v2021_v12, %s1943_s26  ;;  %v1578_v22 = vunpack.i.h.bf16 %v2074_v21  ;;  %v1577_v23 = vunpack.i.l.bf16 %v2074_v21 }
  0x7e   : > { %1720 = vrot.lane.b32.xlu1 %v2001_v4, %s1945_s28 }
  0x7f   : > { %v2089_v25 = vsel %vm247_vm0, %v1577_v23, %v1578_v22 }
  0x82   : > { %1740 = vrot.lane.b32.xlu2 %v2059_v16, %s1946_s29 }
  0x84   : > { %v2083_v24 = vpop.permute.xlu2 %1585 }
  0x85   : > { %1730 = vrot.lane.b32.xlu0 %v2059_v16, %s1947_s30  ;;  %v1588_v10 = vunpack.i.h.bf16 %v2083_v24 }
  0x86   : > { %1735 = vrot.lane.b32.xlu1 %v2059_v16, %s1948_s4 }
  0x87   : > { %v2093_v26 = vpop.permute.xlu0 %1540 }
  0x88   : > { %v1543_v27 = vunpack.i.h.bf16 %v2093_v26  ;;  %v1542_v28 = vunpack.i.l.bf16 %v2093_v26  ;;  %v1551_v29 = vpop.permute.xlu1 %1550 }
  0x89   : > { %v1553_v31 = vunpack.i.h.bf16 %v1551_v29  ;;  %v1552_v32 = vunpack.i.l.bf16 %v1551_v29 }
  0x8a   : > { %v2106_v33 = vsel %vm210_vm1, %v1542_v28, %v1543_v27  ;;  %1755 = vrot.lane.b32.xlu2 %v2018_v11, %s1945_s28 }
  0x8b   : > { %v2112_v34 = vsel %vm210_vm1, %v1552_v32, %v1553_v31 }
  0x8c   : > { %v2114_v35 = vpop.permute.xlu2 %282 }
  0x8d   : > { %1745 = vrot.lane.b32.xlu0 %v2100_v30, %s1944_s27 }
  0x8e   : > { %1750 = vrot.lane.b32.xlu1 %v2100_v30, %s1947_s30 }
  0x8f   : > { %v2120_v36 = vpop.permute.xlu0 %1545 }
  0x90   : > { %v1548_v37 = vunpack.i.h.bf16 %v2120_v36  ;;  %v1556_v38 = vpop.permute.xlu1 %1555 }
  0x91   : > { %v1558_v39 = vunpack.i.h.bf16 %v1556_v38  ;;  %v1557_v40 = vunpack.i.l.bf16 %v1556_v38 }
  0x92   : > { %1770 = vrot.lane.b32.xlu2 %v2059_v16, %s1949_s5  ;;  %v2129_v41 = vsel %vm210_vm1, %v1548_v37, %v1552_v32 }
  0x93   : > { %v2133_v42 = vsel %vm210_vm1, %v1553_v31, %v1557_v40  ;;  %v2141_v44 = vsel %vm210_vm1, %v1558_v39, %v207_v13  ;;  %v2149_v46 = vsel %vm210_vm1, %v1557_v40, %v1558_v39 }
  0x94   : > { %3221 = vst [vmem:[#allocation3_spill] sm:$0xff] %v2133_v42  ;;  %v2135_v43 = vpop.permute.xlu2 %1610 }
  0x95   : > { %1760 = vrot.lane.b32.xlu0 %v2059_v16, %s1950_s6  ;;  %3222 = vst [vmem:[#allocation4_spill] sm:$0xff] %v2141_v44  ;;  %v1613_v47 = vunpack.i.h.bf16 %v2135_v43  ;;  %v1612_v50 = vunpack.i.l.bf16 %v2135_v43 }
  0x96   : > { %1765 = vrot.lane.b32.xlu1 %v2059_v16, %s1951_s7  ;;  %3223 = vst [vmem:[#allocation5_spill] sm:$0xff] %v2149_v46 }
  0x97   : > { %v2145_v45 = vpop.permute.xlu0 %1565  ;;  %v2167_v54 = vsel %vm321_vm2, %v1612_v50, %v1613_v47 }
  0x98   : > { %v1568_v48 = vunpack.i.h.bf16 %v2145_v45  ;;  %v1571_v49 = vpop.permute.xlu1 %1570  ;;  %3224 = vst [vmem:[#allocation6_spill] sm:$0xff] %v2167_v54  ;;  %v1206_v57 = vpack.c.bf16 %v2167_v54, %v2167_v54 }
  0x99   : > { %v1573_v51 = vunpack.i.h.bf16 %v1571_v49  ;;  %v1572_v52 = vunpack.i.l.bf16 %v1571_v49 }
  0x9a   : > { %1785 = vrot.lane.b32.xlu2 %v2059_v16, %s1952_s8  ;;  %v2182_v60 = vsel %vm1220_vm3, %v1206_v57, 0 }
  0x9b   : > { %v252_v53 = vsel %vm247_vm0, %v1568_v48, %v1572_v52  ;;  %v251_v55 = vsel %vm247_vm0, %v1572_v52, %v1573_v51  ;;  %v250_v58 = vsel %vm247_vm0, %v1573_v51, %v1577_v23 }
  0x9c   : > { %v2171_v56 = vpop.permute.xlu2 %1620 }
  0x9d   : > { %1775 = vrot.lane.b32.xlu0 %v2100_v30, %s1948_s4  ;;  %v1623_v23 = vunpack.i.h.bf16 %v2171_v56  ;;  %v1622_v28 = vunpack.i.l.bf16 %v2171_v56 }
  0x9e   : > { %1780 = vrot.lane.b32.xlu1 %v2100_v30, %s1946_s29 }
  0x9f   : > { %v246_v59 = vpop.permute.xlu0 %245 }
  0xa0   : > { %v2186_v61 = vsel %vm247_vm0, %v1578_v22, %v246_v59  ;;  %v2188_v62 = vpop.permute.xlu1 %1580 }
  0xa1   : > { %3225 = vst [vmem:[#allocation7_spill] sm:$0xff] %v2186_v61  ;;  %v1583_v63 = vunpack.i.h.bf16 %v2188_v62  ;;  %v1582_v0 = vunpack.i.l.bf16 %v2188_v62 }
  0xa2   : > { %1800 = vrot.lane.b32.xlu2 %v2100_v30, %s1951_s7 }
  0xa3   : > { %v2199_v1 = vsel %vm284_vm4, %v1582_v0, %v1583_v63 }
  0xa4   : > { %v2201_v3 = vpop.permute.xlu2 %1635 }
  0xa5   : > { %1790 = vrot.lane.b32.xlu0 %v2059_v16, %s1953_s9  ;;  %v1638_v5 = vunpack.i.h.bf16 %v2201_v3  ;;  %v1637_v8 = vunpack.i.l.bf16 %v2201_v3 }
  0xa6   : > { %1795 = vrot.lane.b32.xlu1 %v2100_v30, %s1950_s6 }
  0xa7   : > { %v1591_v9 = vpop.permute.xlu0 %1590  ;;  %v2217_v15 = vsel %vm358_vm5, %v1637_v8, %v1638_v5  ;;  %v1567_v5 = vunpack.i.l.bf16 %v2145_v45 }
  0xa8   : > { %v1593_v11 = vunpack.i.h.bf16 %v1591_v9  ;;  %v1592_v13 = vunpack.i.l.bf16 %v1591_v9  ;;  %3226 = vst [vmem:[#allocation8_spill] sm:$0xff] %v2217_v15  ;;  %v1596_v16 = vpop.permute.xlu1 %1595 }
  0xa9   : > { %v1598_v18 = vunpack.i.h.bf16 %v1596_v16  ;;  %v1597_v21 = vunpack.i.l.bf16 %v1596_v16  ;;  %v1547_v16 = vunpack.i.l.bf16 %v2120_v36 }
  0xaa   : > { %v289_v22 = vsel %vm284_vm4, %v1588_v10, %v1592_v13  ;;  %1815 = vrot.lane.b32.xlu2 %v2004_v6, %s1947_s30  ;;  %v288_v31 = vsel %vm284_vm4, %v1592_v13, %v1593_v11 }
  0xab   : > { %v2225_v29 = vpack.c.bf16 %v289_v22, %v252_v53  ;;  %v287_v32 = vsel %vm284_vm4, %v1593_v11, %v1597_v21  ;;  %v2234_v38 = vsel %vm284_vm4, %v1598_v18, %v2114_v35  ;;  %v286_v39 = vsel %vm284_vm4, %v1597_v21, %v1598_v18 }
  0xac   : > { %3227 = vst [vmem:[#allocation9_spill] sm:$0xff] %v2234_v38  ;;  %v2238_v40 = vpop.permute.xlu2 %1650  ;;  %v2242_v49 = vpack.c.bf16 %v288_v31, %v251_v55  ;;  %v2244_v51 = vpack.c.bf16 %v287_v32, %v250_v58  ;;  %v2249_v53 = vpack.c.bf16 %v286_v39, %v2089_v25  ;;  %v2257_v55 = vsel %vm358_vm5, %v1622_v28, %v1623_v23 }
  0xad   : > { %1805 = vrot.lane.b32.xlu0 %v2100_v30, %s1949_s5  ;;  %v1587_v58 = vunpack.i.l.bf16 %v2083_v24  ;;  %v216_v62 = vsel %vm210_vm1, %v1547_v16, %v1548_v37 }
  0xae   : > { %3228 = vst [vmem:[#allocation10_spill] sm:$0xff] %v2244_v51  ;;  %1810 = vrot.lane.b32.xlu1 %v2004_v6, %s1944_s27 }
  0xaf   : > { %3229 = vst [vmem:[#allocation11_spill] sm:$0xff] %v2249_v53  ;;  %v1601_v35 = vpop.permute.xlu0 %1600  ;;  %v290_v39 = vsel %vm284_vm4, %v1587_v58, %v1588_v10 }
  0xb0   : > { %v1603_v57 = vunpack.i.h.bf16 %v1601_v35  ;;  %v1602_v59 = vunpack.i.l.bf16 %v1601_v35  ;;  %v1606_v0 = vpop.permute.xlu1 %1605 }
  0xb1   : > { %v1608_v9 = vunpack.i.h.bf16 %v1606_v0  ;;  %v1607_v25 = vunpack.i.l.bf16 %v1606_v0  ;;  %v291_v0 = vsel %vm284_vm4, %v1583_v63, %v1587_v58  ;;  %v254_v63 = vsel %vm247_vm0, %v1563_v17, %v1567_v5 }
  0xb2   : > { %v2263_v11 = vsel %vm321_vm2, %v1602_v59, %v1603_v57  ;;  %1830 = vrot.lane.b32.xlu2 %v2004_v6, %s1948_s4  ;;  %vm1216_vm4 = vcmask 588800  }
  0xb3   : > { %v2272_v24 = vsel %vm321_vm2, %v1603_v57, %v1607_v25  ;;  %v2276_v18 = vsel %vm321_vm2, %v1607_v25, %v1608_v9  ;;  %v2282_v21 = vsel %vm321_vm2, %v1608_v9, %v1612_v50  ;;  %v253_v50 = vsel %vm247_vm0, %v1567_v5, %v1568_v48 }
  0xb4   : > { %3230 = vst [vmem:[#allocation12_spill] sm:$0xff] %v2276_v18  ;;  %v2284_v22 = vpop.permute.xlu2 %1665  ;;  %v1203_v28 = vpack.c.bf16 %v2272_v24, %v2272_v24  ;;  %v1204_v31 = vpack.c.bf16 %v2276_v18, %v2276_v18  ;;  %v1205_v32 = vpack.c.bf16 %v2282_v21, %v2282_v21  ;;  %v2323_v58 = vpack.c.bf16 %v290_v39, %v253_v50 }
  0xb5   : > { %3231 = vst [vmem:[#allocation13_spill] sm:$0xff] %v2282_v21  ;;  %1820 = vrot.lane.b32.xlu0 %v2100_v30, %s1952_s8  ;;  %vm580_vm0 = vcmp.lt.s32.totalorder %v2063_v19, 63 }
  0xb6   : > { %1825 = vrot.lane.b32.xlu1 %v2100_v30, %s1953_s9  ;;  %v1222_v35 = vsel %vm1220_vm3, %v1203_v28, 0  ;;  %v1225_v57 = vsel %vm1220_vm3, %v1204_v31, 0  ;;  %v2309_v45 = vsel %vm1220_vm3, %v1205_v32, 0  ;;  %v217_v30 = vsel %vm210_vm1, %v1543_v27, %v1547_v16  ;;  %3232 = vst [vmem:[#allocation14_spill] sm:$0xff] %v2323_v58 }
  0xb7   : > { %v1616_v59 = vpop.permute.xlu0 %1615  ;;  %1258 = vmatpush.bf16.msra.mxu1 %v1222_v35  ;;  %1284 = vmatpush.bf16.msra.mxu3 %v1225_v57  ;;  %v2335_v27 = vpack.c.bf16 %v291_v0, %v254_v63  ;;  %v2363_v31 = vpack.c.bf16 %v217_v30, %v1996_v2  ;;  %v2366_v32 = vpack.c.bf16 %v216_v62, %v2008_v7  ;;  %vm839_vm1 = vcmp.lt.s32.totalorder %v2063_v19, 29 }
  0xb8   : > { %v1618_v48 = vunpack.i.h.bf16 %v1616_v59  ;;  %v1617_v10 = vunpack.i.l.bf16 %v1616_v59  ;;  %v320_v9 = vpop.permute.xlu1 %319 }
  0xb9   : > { %3238 = vst [vmem:[#allocation20_spill] sm:$0xff] %v2366_v32 }
  0xba   : > { %v2327_v25 = vsel %vm321_vm2, %v1617_v10, %v1618_v48  ;;  %v2333_v26 = vsel %vm321_vm2, %v1613_v47, %v1617_v10  ;;  %v322_v14 = vsel %vm321_vm2, %v1618_v48, %v320_v9  ;;  %1845 = vrot.lane.b32.xlu2 %v2004_v6, %s1950_s6  ;;  %v1653_v9 = vunpack.i.h.bf16 %v2238_v40 }
  0xbb   : > { %3233 = vst [vmem:[#allocation15_spill] sm:$0xff] %v2327_v25  ;;  %v1207_v17 = vpack.c.bf16 %v2333_v26, %v2333_v26  ;;  %v1209_v36 = vpack.c.bf16 %v322_v14, %v322_v14  ;;  %v1208_v37 = vpack.c.bf16 %v2327_v25, %v2327_v25  ;;  %1259 = vmatpush.bf16.msra.mxu1 %v2335_v27  ;;  %v1668_v14 = vunpack.i.h.bf16 %v2284_v22 }
  0xbc   : > { %3234 = vst [vmem:[#allocation16_spill] sm:$0xff] %v2333_v26  ;;  %1285 = vmatpush.bf16.msra.mxu3 %v2323_v58  ;;  %v2349_v47 = vpop.permute.xlu2 %1680  ;;  %vm765_vm2 = vcmp.lt.s32.totalorder %v2063_v19, 31 }
  0xbd   : > { %1835 = vrot.lane.b32.xlu0 %v2004_v6, %s1946_s29  ;;  %v2354_v5 = vsel %vm1220_vm3, %v1207_v17, 0  ;;  %v2357_v16 = vsel %vm1220_vm3, %v1209_v36, 0  ;;  %v2360_v28 = vsel %vm1220_vm3, %v1208_v37, 0  ;;  %v3182_v17 = vunpack.i.l.bf16 %v2284_v22 }
  0xbe   : > { %3235 = vst [vmem:[#allocation17_spill] sm:$0xff] %v2354_v5  ;;  %1840 = vrot.lane.b32.xlu1 %v2004_v6, %s1945_s28  ;;  %vm802_vm3 = vcmp.lt.s32.totalorder %v2063_v19, 30 }
  0xbf   : > { %3236 = vst [vmem:[#allocation18_spill] sm:$0xff] %v2357_v16  ;;  %v1626_v50 = vpop.permute.xlu0 %1625  ;;  %1260 = vmatpush.bf16.msra.mxu1 %v2363_v31 }
  0xc0   : > { %3237 = vst [vmem:[#allocation19_spill] sm:$0xff] %v2360_v28  ;;  %1286 = vmatpush.bf16.msra.mxu3 %v2366_v32  ;;  %v1628_v39 = vunpack.i.h.bf16 %v1626_v50  ;;  %v1627_v35 = vunpack.i.l.bf16 %v1626_v50  ;;  %v1631_v57 = vpop.permute.xlu1 %1630  ;;  %v1652_v50 = vunpack.i.l.bf16 %v2238_v40 }
  0xc1   : > { %v1633_v59 = vunpack.i.h.bf16 %v1631_v57  ;;  %v1632_v0 = vunpack.i.l.bf16 %v1631_v57  ;;  %v2423_v57 = vsel %vm432_vm6, %v3182_v17, %v1668_v14 }
  0xc2   : > { %v2376_v2 = vsel %vm358_vm5, %v1623_v23, %v1627_v35  ;;  %1860 = vrot.lane.b32.xlu2 %v2021_v12, %s1948_s4  ;;  %v2384_v48 = vsel %vm358_vm5, %v1627_v35, %v1628_v39 }
  0xc3   : > { %3239 = vst [vmem:[#allocation21_spill] sm:$0xff] %v2384_v48  ;;  %v2390_v56 = vsel %vm358_vm5, %v1632_v0, %v1633_v59  ;;  %v2394_v23 = vsel %vm358_vm5, %v1628_v39, %v1632_v0  ;;  %v2408_v63 = vsel %vm358_vm5, %v1633_v59, %v1637_v8 }
  0xc4   : > { %3240 = vst [vmem:[#allocation22_spill] sm:$0xff] %v2390_v56  ;;  %v2396_v30 = vpop.permute.xlu2 %1695 }
  0xc5   : > { %3241 = vst [vmem:[#allocation23_spill] sm:$0xff] %v2394_v23  ;;  %1850 = vrot.lane.b32.xlu0 %v2021_v12, %s1944_s27  ;;  %v1698_v59 = vunpack.i.h.bf16 %v2396_v30  ;;  %v1697_v36 = vunpack.i.l.bf16 %v2396_v30 }
  0xc6   : > { %3242 = vst [vmem:[#allocation24_spill] sm:$0xff] %v2408_v63  ;;  %1855 = vrot.lane.b32.xlu1 %v2021_v12, %s1947_s30 }
  0xc7   : > { %v1641_v37 = vpop.permute.xlu0 %1640 }
  0xc8   : > { %v1643_v3 = vunpack.i.h.bf16 %v1641_v37  ;;  %v1646_v39 = vpop.permute.xlu1 %1645  ;;  %v1642_v30 = vunpack.i.l.bf16 %v1641_v37 }
  0xc9   : > { %v1648_v8 = vunpack.i.h.bf16 %v1646_v39  ;;  %v1647_v35 = vunpack.i.l.bf16 %v1646_v39 }
  0xca   : > { %1875 = vrot.lane.b32.xlu2 %v2021_v12, %s1950_s6  ;;  %v2471_v37 = vsel %vm395_vm7, %v1642_v30, %v1643_v3 }
  0xcb   : > { %v2430_v0 = vsel %vm395_vm7, %v1643_v3, %v1647_v35  ;;  %v2434_v43 = vsel %vm395_vm7, %v1647_v35, %v1648_v8  ;;  %v2438_v39 = vsel %vm395_vm7, %v1648_v8, %v1652_v50  ;;  %v2453_v8 = vsel %vm469_vm8, %v1697_v36, %v1698_v59 }
  0xcc   : > { %3243 = vst [vmem:[#allocation25_spill] sm:$0xff] %v2438_v39  ;;  %v2446_v62 = vpop.permute.xlu2 %1710 }
  0xcd   : > { %1865 = vrot.lane.b32.xlu0 %v2021_v12, %s1946_s29  ;;  %3244 = vst [vmem:[#allocation26_spill] sm:$0xff] %v2453_v8 }
  0xce   : > { %1870 = vrot.lane.b32.xlu1 %v2021_v12, %s1945_s28 }
  0xcf   : > { %v1656_v35 = vpop.permute.xlu0 %1655 }
  0xd0   : > { %v1658_v10 = vunpack.i.h.bf16 %v1656_v35  ;;  %v1657_v4 = vunpack.i.l.bf16 %v1656_v35  ;;  %v2455_v13 = vpop.permute.xlu1 %1660 }
  0xd1   : > { %v3186_v52 = vunpack.i.h.bf16 %v2455_v13  ;;  %v1662_v40 = vunpack.i.l.bf16 %v2455_v13 }
  0xd2   : > { %v2461_v7 = vsel %vm395_vm7, %v1653_v9, %v1657_v4  ;;  %v2465_v17 = vsel %vm395_vm7, %v1657_v4, %v1658_v10  ;;  %1890 = vrot.lane.b32.xlu2 %v2004_v6, %s1952_s8  ;;  %v2499_v4 = vsel %vm395_vm7, %v1652_v50, %v1653_v9  ;;  %v1713_v50 = vunpack.i.h.bf16 %v2446_v62 }
  0xd3   : > { %3245 = vst [vmem:[#allocation27_spill] sm:$0xff] %v2461_v7  ;;  %v2477_v59 = vsel %vm432_vm6, %v1662_v40, %v3186_v52 }
  0xd4   : > { %3246 = vst [vmem:[#allocation28_spill] sm:$0xff] %v2465_v17  ;;  %v2485_v35 = vpop.permute.xlu2 %1725 }
  0xd5   : > { %1880 = vrot.lane.b32.xlu0 %v2004_v6, %s1951_s7  ;;  %3249 = vst [vmem:[#allocation31_spill] sm:$0xff] %v2499_v4 }
  0xd6   : > { %1885 = vrot.lane.b32.xlu1 %v2004_v6, %s1949_s5 }
  0xd7   : > { %v1671_v10 = vpop.permute.xlu0 %1670 }
  0xd8   : > { %v1673_v3 = vunpack.i.h.bf16 %v1671_v10  ;;  %v1672_v30 = vunpack.i.l.bf16 %v1671_v10  ;;  %v1676_v25 = vpop.permute.xlu1 %1675 }
  0xd9   : > { %v1678_v15 = vunpack.i.h.bf16 %v1676_v25  ;;  %v1677_v26 = vunpack.i.l.bf16 %v1676_v25 }
  0xda   : > { %v2489_v40 = vsel %vm432_vm6, %v1672_v30, %v1673_v3  ;;  %v2493_v52 = vsel %vm432_vm6, %v1668_v14, %v1672_v30  ;;  %1905 = vrot.lane.b32.xlu2 %v2021_v12, %s1949_s5  ;;  %v1712_v30 = vunpack.i.l.bf16 %v2446_v62 }
  0xdb   : > { %3247 = vst [vmem:[#allocation29_spill] sm:$0xff] %v2489_v40  ;;  %v2507_v63 = vsel %vm432_vm6, %v1673_v3, %v1677_v26  ;;  %v2515_v9 = vsel %vm432_vm6, %v1677_v26, %v1678_v15 }
  0xdc   : > { %3248 = vst [vmem:[#allocation30_spill] sm:$0xff] %v2493_v52  ;;  %v2527_v10 = vpop.permute.xlu2 %1740  ;;  %v2531_v62 = vsel %vm506_vm9, %v1712_v30, %v1713_v50 }
  0xdd   : > { %3250 = vst [vmem:[#allocation32_spill] sm:$0xff] %v2507_v63  ;;  %1895 = vrot.lane.b32.xlu0 %v2004_v6, %s1953_s9  ;;  %v3255_v42 = vunpack.i.h.bf16 %v2527_v10  ;;  %v3256_v16 = vunpack.i.l.bf16 %v2527_v10 }
  0xde   : > { %3251 = vst [vmem:[#allocation33_spill] sm:$0xff] %v2515_v9  ;;  %1900 = vrot.lane.b32.xlu1 %v2021_v12, %s1951_s7 }
  0xdf   : > { %v2523_v3 = vpop.permute.xlu0 %1685  ;;  %v661_v5 = vsel %vm654_vm13, %v3256_v16, %v3255_v42 }
  0xe0   : > { %v1688_v6 = vunpack.i.h.bf16 %v2523_v3  ;;  %v1691_v14 = vpop.permute.xlu1 %1690  ;;  %v3196_v63 = vunpack.i.l.bf16 %v2523_v3  ;;  %v3260_v4 = vunpack.i.l.bf16 %v2523_v3 }
  0xe1   : > { %v1693_v15 = vunpack.i.h.bf16 %v1691_v14  ;;  %v1692_v26 = vunpack.i.l.bf16 %v1691_v14 }
  0xe2   : > { %v2564_v14 = vsel %vm469_vm8, %v3196_v63, %v1688_v6 }
  0xe3   : > { %v2535_v25 = vsel %vm469_vm8, %v1692_v26, %v1693_v15  ;;  %v2539_v17 = vsel %vm469_vm8, %v1688_v6, %v1692_v26  ;;  %v2543_v9 = vsel %vm469_vm8, %v1693_v15, %v1697_v36 }
  0xe4   : > { %3252 = vst [vmem:[#allocation34_spill] sm:$0xff] %v2543_v9  ;;  %v2558_v15 = vpop.permute.xlu2 %1755 }
  0xe5   : > { %1910 = vrot.lane.b32.xlu0 %v2021_v12, %s1952_s8  ;;  %v3257_v54 = vunpack.i.l.bf16 %v2558_v15 }
  0xe6   : > { %1915 = vrot.lane.b32.xlu1 %v2021_v12, %s1953_s9 }
  0xe7   : > { %v2551_v7 = vpop.permute.xlu0 %1700 }
  0xe8   : > { %v2554_v53 = vpop.permute.xlu1 %1705 }
  0xe9   : > { %v1708_v26 = vunpack.i.h.bf16 %v2554_v53  ;;  %v3197_v36 = vunpack.i.l.bf16 %v2554_v53 }
  0xeb   : > { %v2570_v12 = vsel %vm506_vm9, %v3197_v36, %v1708_v26  ;;  %v2574_v61 = vsel %vm506_vm9, %v1708_v26, %v1712_v30  ;;  %v3201_v30 = vunpack.i.h.bf16 %v2485_v35  ;;  %v1727_v26 = vunpack.i.l.bf16 %v2485_v35 }
  0xec   : > { %v2597_v38 = vpop.permute.xlu2 %1770 }
  0xed   : > { %v3214_v42 = vunpack.i.h.bf16 %v2597_v38  ;;  %v3215_v16 = vunpack.i.l.bf16 %v2597_v38 }
  0xef   : > { %v1716_v51 = vpop.permute.xlu0 %1715 }
  0xf0   : > { %v1718_v46 = vunpack.i.h.bf16 %v1716_v51  ;;  %v1717_v6 = vunpack.i.l.bf16 %v1716_v51  ;;  %v2580_v63 = vpop.permute.xlu1 %1720 }
  0xf2   : > { %v2584_v44 = vsel %vm506_vm9, %v1713_v50, %v1717_v6  ;;  %v2588_v36 = vsel %vm506_vm9, %v1717_v6, %v1718_v46  ;;  %v698_v46 = vsel %vm691_vm10, %v1727_v26, %v3201_v30 }
  0xf3   : > { %3253 = vst [vmem:[#allocation35_spill] sm:$0xff] %v2584_v44 }
  0xf4   : > { %3254 = vst [vmem:[#allocation36_spill] sm:$0xff] %v2588_v36  ;;  %v2632_v23 = vpop.permute.xlu2 %1785 }
  0xf7   : > { %v2599_v50 = vpop.permute.xlu0 %1730 }
  0xf8   : > { %v3207_v9 = vunpack.i.h.bf16 %v2599_v50  ;;  %v1732_v51 = vunpack.i.l.bf16 %v2599_v50  ;;  %v2610_v8 = vpop.permute.xlu1 %1735 }
  0xf9   : > { %v3206_v36 = vunpack.i.h.bf16 %v2610_v8  ;;  %v1737_v30 = vunpack.i.l.bf16 %v2610_v8 }
  0xfa   : > { %v735_v6 = vsel %vm728_vm11, %v1732_v51, %v3207_v9 }
  0xfb   : > { %v1169_v28 = vpack.c.bf16 %v735_v6, %v698_v46  ;;  %v624_v44 = vsel %vm617_vm12, %v1737_v30, %v3206_v36  ;;  %v3316_v19 = vld [vmem:[#allocation36_spill] sm:$0xff] }
  0xfc   : > { %v1162_v21 = vpack.c.bf16 %v661_v5, %v624_v44 }
  0xfd   : > { %1268 = vmatpush.bf16.msra.mxu2 %v1169_v28  ;;  %v1723_v28 = vunpack.i.h.bf16 %v2580_v63 }
  0xff   : > { %v2630_v32 = vpop.permute.xlu0 %1745  ;;  %v550_v56 = vsel %vm543_vm15, %v1723_v28, %v3257_v54 }
 0x100   : > { %v1747_v46 = vunpack.i.l.bf16 %v2630_v32  ;;  %v2635_v6 = vpop.permute.xlu1 %1750 }
 0x101   : > { %1269 = vmatpush.bf16.msra.mxu2 %v1162_v21  ;;  %v1752_v36 = vunpack.i.l.bf16 %v2635_v6 }
 0x102   : > { %v699_v9 = vsel %vm691_vm10, %v1747_v46, %v1727_v26  ;;  %v883_v46 = vsel %vm876_vm14, %v3215_v16, %v3214_v42  ;;  %v3259_v16 = vunpack.i.l.bf16 %v2554_v53  ;;  %v3262_v53 = vunpack.i.h.bf16 %v2455_v13 }
 0x103   : > { %v736_v58 = vsel %vm728_vm11, %v1752_v36, %v1732_v51  ;;  %v1703_v36 = vunpack.i.h.bf16 %v2551_v7  ;;  %v3263_v13 = vunpack.i.l.bf16 %v2527_v10 }
 0x104   : > { %v1168_v44 = vpack.c.bf16 %v736_v58, %v699_v9  ;;  %v1683_v58 = vunpack.i.h.bf16 %v2349_v47 }
 0x105   : > { %v513_v48 = vsel %vm506_vm9, %v1703_v36, %v3259_v16 }
 0x106   : > { %1242 = vmatpush.bf16.msra.mxu0 %v1168_v44  ;;  %v2664_v44 = vpop.permute.xlu2 %1800 }
 0x107   : > { %v2647_v21 = vpop.permute.xlu0 %1760 }
 0x108   : > { %v1762_v51 = vunpack.i.l.bf16 %v2647_v21  ;;  %v2655_v9 = vpop.permute.xlu1 %1765  ;;  %v3258_v39 = vunpack.i.h.bf16 %v2647_v21 }
 0x109   : > { %v3219_v5 = vunpack.i.h.bf16 %v2655_v9  ;;  %v1767_v26 = vunpack.i.l.bf16 %v2655_v9 }
 0x10a   : > { %v587_v52 = vsel %vm580_vm0, %v1762_v51, %v3258_v39  ;;  %v476_v39 = vsel %vm469_vm8, %v1683_v58, %v3260_v4 }
 0x10b   : > { %v1155_v18 = vpack.c.bf16 %v587_v52, %v550_v56  ;;  %v846_v42 = vsel %vm839_vm1, %v1767_v26, %v3219_v5  ;;  %v1148_v56 = vpack.c.bf16 %v513_v48, %v476_v39  ;;  %v3261_v5 = vunpack.i.l.bf16 %v2284_v22 }
 0x10c   : > { %v1183_v54 = vpack.c.bf16 %v883_v46, %v846_v42  ;;  %v3220_v48 = vunpack.i.h.bf16 %v2632_v23  ;;  %v1787_v46 = vunpack.i.l.bf16 %v2632_v23 }
 0x10d   : > { %1270 = vmatpush.bf16.msra.mxu2 %v1155_v18  ;;  %v439_v16 = vsel %vm432_vm6, %v3262_v53, %v3261_v5 }
 0x10e   : > { %1287 = vmatpush.bf16.msra.mxu3 %v1183_v54  ;;  %v1141_v42 = vpack.c.bf16 %v439_v16, %v2430_v0  ;;  %v2707_v22 = vpop.permute.xlu2 %1815  ;;  %v1722_v0 = vunpack.i.l.bf16 %v2580_v63  ;;  %v3264_v16 = vpack.c.bf16 %v2376_v2, %v2272_v24  ;;  %v941_v63 = vld [vmem:[%s3179_s1 + $0x8] sm:$0xff] }
 0x10f   : > { %v2690_v52 = vpop.permute.xlu0 %1775 }
 0x110   : > { %v1777_v40 = vunpack.i.l.bf16 %v2690_v52  ;;  %v2699_v18 = vpop.permute.xlu1 %1780  ;;  %v551_v24 = vsel %vm543_vm15, %v1722_v0, %v1723_v28 }
 0x111   : > { %1271 = vmatpush.bf16.msra.mxu2 %v1148_v56  ;;  %v1782_v3 = vunpack.i.l.bf16 %v2699_v18  ;;  %v772_v56 = vsel %vm765_vm2, %v1787_v46, %v3220_v48 }
 0x112   : > { %v625_v4 = vsel %vm617_vm12, %v1777_v40, %v1737_v30 }
 0x113   : > { %v662_v5 = vsel %vm654_vm13, %v1782_v3, %v3263_v13  ;;  %v1702_v3 = vunpack.i.l.bf16 %v2551_v7 }
 0x114   : > { %v1161_v54 = vpack.c.bf16 %v662_v5, %v625_v4  ;;  %v1682_v5 = vunpack.i.l.bf16 %v2349_v47 }
 0x115   : > { %1272 = vmatpush.bf16.msra.mxu2 %v1141_v42  ;;  %v514_v47 = vsel %vm506_vm9, %v1702_v3, %v1703_v36  ;;  %v940_v3 = vld [vmem:[%s3179_s1] sm:$0xff] }
 0x116   : > { %1243 = vmatpush.bf16.msra.mxu0 %v1161_v54  ;;  %v2747_v54 = vpack.c.bf16 %v941_v63, %v941_v63  ;;  %v2751_v48 = vpop.permute.xlu2 %1830  ;;  %v477_v0 = vsel %vm469_vm8, %v1682_v5, %v1683_v58  ;;  %v3265_v58 = vunpack.i.l.bf16 %v2597_v38  ;;  %v1753_v5 = vunpack.i.h.bf16 %v2635_v6 }
 0x117   : > { %v2714_v39 = vpop.permute.xlu0 %1790  ;;  %v1818_v6 = vunpack.i.h.bf16 %v2707_v22 }
 0x118   : > { %v1793_v40 = vunpack.i.h.bf16 %v2714_v39  ;;  %v1792_v30 = vunpack.i.l.bf16 %v2714_v39  ;;  %v2726_v53 = vpop.permute.xlu1 %1795 }
 0x119   : > { %1273 = vmatpush.bf16.msra.mxu2 %v3264_v16  ;;  %v1797_v4 = vunpack.i.l.bf16 %v2726_v53  ;;  %v1802_v16 = vunpack.i.l.bf16 %v2664_v44 }
 0x11a   : > { %v809_v42 = vsel %vm802_vm3, %v1792_v30, %v1793_v40 }
 0x11b   : > { %v1176_v13 = vpack.c.bf16 %v809_v42, %v772_v56  ;;  %v588_v2 = vsel %vm580_vm0, %v1797_v4, %v1762_v51  ;;  %v847_v36 = vsel %vm839_vm1, %v1802_v16, %v1767_v26  ;;  %v1748_v4 = vunpack.i.h.bf16 %v2630_v32  ;;  %v1922_v32 = vld [vmem:[%s1989_s17 + $0x20] sm:$0xff] }
 0x11c   : > { %v1154_v7 = vpack.c.bf16 %v588_v2, %v551_v24  ;;  %v2782_v42 = vpack.c.bf16 %v940_v3, %v940_v3  ;;  %v3266_v24 = vunpack.i.h.bf16 %v2597_v38  ;;  %v3267_v38 = vpack.c.bf16 %v2477_v59, %v2471_v37 }
 0x11d   : > { %1274 = vmatpush.bf16.msra.mxu2 %v2335_v27  ;;  %1288 = vmatpush.bf16.msra.mxu3 %v1176_v13  ;;  %v1921_v13 = vld [vmem:[%s1989_s17 + $0x18] sm:$0xff]  ;;  %v1778_v3 = vunpack.i.h.bf16 %v2690_v52  ;;  %v3271_v52 = vunpack.i.h.bf16 %v2632_v23 }
 0x11e   : > { %1244 = vmatpush.bf16.msra.mxu0 %v1154_v7  ;;  %v2786_v26 = vpack.c.bf16 %v2129_v41, %v1921_v13  ;;  %v2800_v41 = vpack.c.bf16 %v2112_v34, %v1922_v32  ;;  %v3269_v34 = vunpack.i.h.bf16 %v2485_v35  ;;  %v3270_v35 = vunpack.i.h.bf16 %v2599_v50 }
 0x11f   : > { %v2756_v28 = vpop.permute.xlu0 %1805 }
 0x120   : > { %v1807_v51 = vunpack.i.l.bf16 %v2756_v28  ;;  %1501 = vmatmul.msk.bf16.vlgmr.msra.gmra.mxu3 %vm1216_vm4, %v2747_v54  ;;  %v2763_v27 = vpop.permute.xlu1 %1810  ;;  %v1808_v56 = vunpack.i.h.bf16 %v2756_v28  ;;  %v734_v13 = vsel %vm728_vm11, %v3270_v35, %v1753_v5  ;;  %v3273_v35 = vunpack.i.h.bf16 %v2610_v8  ;;  %v3300_v28 = vld [vmem:[#allocation18_spill] sm:$0xff] }
 0x121   : > { %1310 = vmatpush.bf16.msrb.mxu3 %v2309_v45  ;;  %v1147_v45 = vpack.c.bf16 %v514_v47, %v477_v0  ;;  %1275 = vmatpush.bf16.msra.mxu2 %v2363_v31  ;;  %v1803_v31 = vunpack.i.h.bf16 %v2664_v44  ;;  %v1813_v7 = vunpack.i.h.bf16 %v2763_v27  ;;  %v3268_v47 = vunpack.i.h.bf16 %v2655_v9 }
 0x122   : > { %v884_v63 = vsel %vm876_vm14, %v1807_v51, %v3265_v58  ;;  %v882_v2 = vsel %vm876_vm14, %v3266_v24, %v1808_v56  ;;  %v697_v0 = vsel %vm691_vm10, %v3269_v34, %v1748_v4  ;;  %v1783_v9 = vunpack.i.h.bf16 %v2699_v18 }
 0x123   : > { %1245 = vmatpush.bf16.msra.mxu0 %v1147_v45  ;;  %v845_v51 = vsel %vm839_vm1, %v3268_v47, %v1803_v31  ;;  %v2819_v45 = vpop.permute.xlu2 %1845  ;;  %v1833_v47 = vunpack.i.h.bf16 %v2751_v48  ;;  %v1170_v34 = vpack.c.bf16 %v734_v13, %v697_v0  ;;  %v1798_v0 = vunpack.i.h.bf16 %v2726_v53 }
 0x124   : > { %1276 = vmatmul.bf16.vlgmr.msra.gmra.mxu2 %v2782_v42  ;;  %v1184_v58 = vpack.c.bf16 %v882_v2, %v845_v51 }
 0x125   : > { %1311 = vmatpush.bf16.msrb.mxu3 %v2225_v29  ;;  %1336 = vmatpush.bf16.msrb.mxu2 %v2182_v60  ;;  %v1182_v60 = vpack.c.bf16 %v884_v63, %v847_v36  ;;  %v1812_v36 = vunpack.i.l.bf16 %v2763_v27  ;;  %v1817_v63 = vunpack.i.l.bf16 %v2707_v22 }
 0x127   : > { %1261 = vmatpush.bf16.msra.mxu1 %v1182_v60  ;;  %1246 = vmatpush.bf16.msra.mxu0 %v3267_v38  ;;  %v2807_v16 = vpop.permute.xlu0 %1820  ;;  %v732_v2 = vsel %vm728_vm11, %v1817_v63, %v1818_v6  ;;  %v3272_v38 = vpack.c.bf16 %v2257_v55, %v2263_v11  ;;  %v1848_v11 = vunpack.i.h.bf16 %v2819_v45  ;;  %v733_v53 = vsel %vm728_vm11, %v1753_v5, %v1817_v63 }
 0x128   : > { %v1823_v37 = vunpack.i.h.bf16 %v2807_v16  ;;  %v1822_v59 = vunpack.i.l.bf16 %v2807_v16  ;;  %v2827_v60 = vpop.permute.xlu1 %1825 }
 0x129   : > { %1312 = vmatpush.bf16.msrb.mxu3 %v2786_v26  ;;  %1337 = vmatpush.bf16.msrb.mxu2 %v2242_v49  ;;  %v1828_v24 = vunpack.i.h.bf16 %v2827_v60  ;;  %v1827_v32 = vunpack.i.l.bf16 %v2827_v60 }
 0x12a   : > { %v773_v18 = vsel %vm765_vm2, %v1822_v59, %v1787_v46  ;;  %v771_v50 = vsel %vm765_vm2, %v3271_v52, %v1823_v37  ;;  %v695_v46 = vsel %vm691_vm10, %v1812_v36, %v1813_v7  ;;  %v1847_v52 = vunpack.i.l.bf16 %v2819_v45 }
 0x12b   : > { %1247 = vmatpush.bf16.msra.mxu0 %v3272_v38  ;;  %v810_v23 = vsel %vm802_vm3, %v1827_v32, %v1792_v30  ;;  %v808_v55 = vsel %vm802_vm3, %v1793_v40, %v1828_v24  ;;  %v623_v30 = vsel %vm617_vm12, %v3273_v35, %v1778_v3  ;;  %v3274_v32 = vunpack.i.h.bf16 %v2527_v10 }
 0x12c   : > { %v1175_v51 = vpack.c.bf16 %v810_v23, %v773_v18  ;;  %v1177_v59 = vpack.c.bf16 %v808_v55, %v771_v50  ;;  %v696_v40 = vsel %vm691_vm10, %v1748_v4, %v1812_v36  ;;  %v1172_v13 = vpack.c.bf16 %v732_v2, %v695_v46  ;;  %v1923_v50 = vld [vmem:[%s1989_s17] sm:$0xff]  ;;  %v2904_v23 = vpop.permute.xlu2 %1860 }
 0x12d   : > { %1313 = vmatpush.bf16.msrb.mxu3 %v1184_v58  ;;  %1338 = vmatpush.bf16.msrb.mxu2 %v2800_v41  ;;  %v1832_v58 = vunpack.i.l.bf16 %v2751_v48  ;;  %v660_v39 = vsel %vm654_vm13, %v3274_v32, %v1783_v9  ;;  %v3275_v18 = vpack.c.bf16 %v2199_v1, %v2072_v20  ;;  %v1119_v10 = vpack.c.bf16 %v2106_v33, %v1923_v50 }
 0x12e   : > { %1262 = vmatpush.bf16.msra.mxu1 %v1175_v51  ;;  %v1758_v1 = vunpack.i.h.bf16 %v2558_v15  ;;  %v1163_v33 = vpack.c.bf16 %v660_v39, %v623_v30  ;;  %v1171_v2 = vpack.c.bf16 %v733_v53, %v696_v40  ;;  %v584_v46 = vsel %vm580_vm0, %v1847_v52, %v1848_v11 }
 0x12f   : > { %1248 = vmatpush.bf16.msra.mxu0 %v3275_v18  ;;  %v2885_v8 = vpop.permute.xlu0 %1835  ;;  %v621_v20 = vsel %vm617_vm12, %v1832_v58, %v1833_v47  ;;  %v622_v30 = vsel %vm617_vm12, %v1778_v3, %v1832_v58  ;;  %v3279_v53 = vpack.c.bf16 %v2531_v62, %v2535_v25  ;;  %v3288_v62 = vld [vmem:[#allocation30_spill] sm:$0xff] }
 0x130   : > { %v1838_v38 = vunpack.i.h.bf16 %v2885_v8  ;;  %v1837_v4 = vunpack.i.l.bf16 %v2885_v8  ;;  %v2898_v36 = vpop.permute.xlu1 %1840 }
 0x131   : > { %1314 = vmatpush.bf16.msrb.mxu3 %v1177_v59  ;;  %v1843_v5 = vunpack.i.h.bf16 %v2898_v36  ;;  %v1842_v63 = vunpack.i.l.bf16 %v2898_v36  ;;  %1500 = vmatmul.msk.bf16.vlgmr.msra.gmra.mxu1 %vm1216_vm4, %v2747_v54  ;;  %v3276_v59 = vunpack.i.h.bf16 %v2647_v21  ;;  %v3277_v21 = vunpack.i.l.bf16 %v2558_v15 }
 0x132   : > { %1294 = vmatpush.bf16.msrb.mxu1 %v1170_v34  ;;  %v658_v55 = vsel %vm654_vm13, %v1837_v4, %v1838_v38  ;;  %v659_v51 = vsel %vm654_vm13, %v1783_v9, %v1837_v4  ;;  %v585_v15 = vsel %vm580_vm0, %v1798_v0, %v1847_v52  ;;  %v3278_v4 = vpack.c.bf16 %v2570_v12, %v2564_v14  ;;  %v3283_v14 = vld [vmem:[#allocation31_spill] sm:$0xff] }
 0x133   : > { %1249 = vmatpush.bf16.msra.mxu0 %v1119_v10  ;;  %v1165_v34 = vpack.c.bf16 %v658_v55, %v621_v20  ;;  %v586_v35 = vsel %vm580_vm0, %v3276_v59, %v1798_v0  ;;  %v1164_v32 = vpack.c.bf16 %v659_v51, %v622_v30  ;;  %v547_v9 = vsel %vm543_vm15, %v1842_v63, %v1843_v5  ;;  %v3295_v59 = vld [vmem:[#allocation23_spill] sm:$0xff] }
 0x134   : > { %1502 = vmatmul.msk.bf16.vlgmr.msrb.gmra.mxu3 %vm1216_vm4, %v2747_v54  ;;  %v549_v39 = vsel %vm543_vm15, %v3277_v21, %v1758_v1  ;;  %v1158_v40 = vpack.c.bf16 %v584_v46, %v547_v9  ;;  %v548_v58 = vsel %vm543_vm15, %v1758_v1, %v1842_v63  ;;  %v2941_v10 = vpop.permute.xlu2 %1875  ;;  %v3280_v1 = vpack.c.bf16 %v2423_v57, %v2434_v43  ;;  %v3286_v46 = vld [vmem:[#allocation12_spill] sm:$0xff]  ;;  %v3289_v63 = vld [vmem:[#allocation25_spill] sm:$0xff]  ;;  %v3291_v43 = vld [vmem:[#allocation22_spill] sm:$0xff] }
 0x135   : > { %1346 = vmatpush.bf16.msra.mxu3 %v1172_v13  ;;  %v1156_v13 = vpack.c.bf16 %v586_v35, %v549_v39  ;;  %v1157_v50 = vpack.c.bf16 %v585_v15, %v548_v58  ;;  %v3281_v52 = vpack.c.bf16 %v2574_v61, %v2539_v17  ;;  %v3290_v55 = vpack.c.bf16 %v3288_v62, %v3289_v63  ;;  %v3292_v57 = vld [vmem:[#allocation6_spill] sm:$0xff]  ;;  %v3296_v35 = vld [vmem:[#allocation13_spill] sm:$0xff] }
 0x136   : > { %1295 = vmatpush.bf16.msrb.mxu1 %v1163_v33  ;;  %1250 = vmatmul.bf16.vlgmr.msra.gmra.mxu0 %v2782_v42  ;;  %v3282_v33 = vld [vmem:[#allocation29_spill] sm:$0xff]  ;;  %v3293_v51 = vpack.c.bf16 %v3291_v43, %v3292_v57  ;;  %v3297_v30 = vpack.c.bf16 %v3295_v59, %v3296_v35  ;;  %v1862_v62 = vunpack.i.l.bf16 %v2904_v23  ;;  %v3305_v59 = vld [vmem:[#allocation19_spill] sm:$0xff] }
 0x137   : > { %1320 = vmatpush.bf16.msrb.mxu0 %v1171_v2  ;;  %v2933_v3 = vpop.permute.xlu0 %1850  ;;  %v3284_v12 = vpack.c.bf16 %v3282_v33, %v3283_v14  ;;  %v3285_v2 = vld [vmem:[#allocation21_spill] sm:$0xff]  ;;  %v1925_v33 = vld [vmem:[%s1989_s17 + $0x38] sm:$0xff]  ;;  %v3302_v14 = vld [vmem:[#allocation4_spill] sm:$0xff] }
 0x138   : > { %v2937_v18 = vpop.permute.xlu1 %1855  ;;  %v3287_v25 = vpack.c.bf16 %v3285_v2, %v3286_v46  ;;  %v1852_v44 = vunpack.i.l.bf16 %v2933_v3  ;;  %v3299_v15 = vld [vmem:[#allocation17_spill] sm:$0xff]  ;;  %v1853_v16 = vunpack.i.h.bf16 %v2933_v3  ;;  %v1863_v3 = vunpack.i.h.bf16 %v2904_v23 }
 0x139   : > { %1347 = vmatpush.bf16.msra.mxu3 %v1165_v34  ;;  %v3294_v34 = vld [vmem:[#allocation14_spill] sm:$0xff]  ;;  %v3303_v2 = vld [vmem:[#allocation5_spill] sm:$0xff] }
 0x13a   : > { %1296 = vmatpush.bf16.msrb.mxu1 %v1156_v13 }
 0x13b   : > { %1321 = vmatpush.bf16.msrb.mxu0 %v1164_v32 }
 0x13c   : > { %v2971_v61 = vpop.permute.xlu2 %1890 }
 0x13d   : > { %1348 = vmatpush.bf16.msra.mxu3 %v1158_v40  ;;  %v3298_v40 = vld [vmem:[#allocation20_spill] sm:$0xff]  ;;  %v1892_v58 = vunpack.i.l.bf16 %v2971_v61 }
 0x13e   : > { %1297 = vmatpush.bf16.msrb.mxu1 %v3278_v4 }
 0x13f   : > { %1322 = vmatpush.bf16.msrb.mxu0 %v1157_v50  ;;  %v2949_v20 = vpop.permute.xlu0 %1865  ;;  %v1954_v50 = vmov 0   ;;  %v770_v22 = vsel %vm765_vm2, %v1823_v37, %v1892_v58 }
 0x140   : > { %v2957_v0 = vpop.permute.xlu1 %1870  ;;  %1919 = vset.pattern.permute.xlu2 %v1954_v50  ;;  %1920 = vset.pattern.permute.xlu0 %v1954_v50  ;;  %v3309_v50 = vld [vmem:[#allocation11_spill] sm:$0xff] }
 0x141   : > { %1349 = vmatpush.bf16.msra.mxu3 %v3279_v53  ;;  %v1924_v53 = vld [vmem:[%s1989_s17 + $0x28] sm:$0xff]  ;;  %v1873_v45 = vunpack.i.h.bf16 %v2957_v0 }
 0x142   : > { %1298 = vmatpush.bf16.msrb.mxu1 %v3280_v1  ;;  %v3301_v1 = vld [vmem:[#allocation3_spill] sm:$0xff] }
 0x143   : > { %1323 = vmatpush.bf16.msrb.mxu0 %v3281_v52  ;;  %v3008_v52 = vpack.c.bf16 %v3301_v1, %v1924_v53  ;;  %v1872_v53 = vunpack.i.l.bf16 %v2957_v0  ;;  %v1877_v1 = vunpack.i.l.bf16 %v2941_v10 }
 0x145   : > { %1350 = vmatpush.bf16.msra.mxu3 %v3284_v12  ;;  %v1926_v12 = vld [vmem:[%s1989_s17 + $0x30] sm:$0xff]  ;;  %v583_v36 = vsel %vm580_vm0, %v1848_v11, %v1877_v1  ;;  %v545_v0 = vsel %vm543_vm15, %v1872_v53, %v1873_v45  ;;  %s1510_s17 = smul.u32 56, %s3329_s13 }
 0x146   : > { %1299 = vmatpush.bf16.msrb.mxu1 %v3287_v25  ;;  %v3014_v46 = vpack.c.bf16 %v3303_v2, %v1926_v12  ;;  %v1210_v25 = vld [vmem:[%s3180_s2] sm:$0xff] }
 0x147   : > { %1324 = vmatpush.bf16.msrb.mxu0 %v3290_v55  ;;  %v2973_v17 = vpop.permute.xlu0 %1880  ;;  %1213 = vperm.xlu2 %1919, %v1210_v25   ;;  %s3166_s21 = scalar_lea.vmem %s3181_s3, %s1510_s17 }
 0x148   : > { %v1882_v32 = vunpack.i.l.bf16 %v2973_v17  ;;  %v2980_v9 = vpop.permute.xlu1 %1885  ;;  %v1883_v55 = vunpack.i.h.bf16 %v2973_v17 }
 0x149   : > { %1351 = vmatpush.bf16.msra.mxu3 %v3293_v51  ;;  %v1887_v21 = vunpack.i.l.bf16 %v2980_v9  ;;  %v1888_v63 = vunpack.i.h.bf16 %v2980_v9  ;;  %v694_v51 = vsel %vm691_vm10, %v1813_v7, %v1852_v44  ;;  %v3307_v7 = vld [vmem:[#allocation7_spill] sm:$0xff] }
 0x14a   : > { %1300 = vmatpush.bf16.msrb.mxu1 %v3294_v34  ;;  %v844_v39 = vsel %vm839_vm1, %v1803_v31, %v1882_v32  ;;  %v843_v60 = vsel %vm839_vm1, %v1882_v32, %v1883_v55  ;;  %v620_v32 = vsel %vm617_vm12, %v1833_v47, %v1862_v62 }
 0x14b   : > { %1325 = vmatpush.bf16.msrb.mxu0 %v3297_v30  ;;  %v881_v13 = vsel %vm876_vm14, %v1808_v56, %v1887_v21  ;;  %v3306_v30 = vld [vmem:[#allocation9_spill] sm:$0xff] }
 0x14c   : > { %v1185_v31 = vpack.c.bf16 %v881_v13, %v844_v39  ;;  %v3308_v9 = vpack.c.bf16 %v3306_v30, %v3307_v7  ;;  %v3313_v7 = vld [vmem:[#allocation32_spill] sm:$0xff] }
 0x14d   : > { %1352 = vmatpush.bf16.msra.mxu3 %v2242_v49  ;;  %v1857_v49 = vunpack.i.l.bf16 %v2937_v18 }
 0x14e   : > { %1301 = vmatpush.bf16.msrb.mxu1 %v3298_v40  ;;  %1339 = vmatpush.bf16.msrb.mxu2 %v1185_v31  ;;  %v1893_v40 = vunpack.i.h.bf16 %v2971_v61 }
 0x14f   : > { %1326 = vmatpush.bf16.msrb.mxu0 %v2225_v29  ;;  %v2999_v29 = vpop.permute.xlu2 %1905  ;;  %v3003_v4 = vpop.permute.xlu0 %1895  ;;  %v731_v57 = vsel %vm728_vm11, %v1818_v6, %v1857_v49  ;;  %v1867_v6 = vunpack.i.l.bf16 %v2949_v20 }
 0x150   : > { %v1908_v56 = vunpack.i.h.bf16 %v2999_v29  ;;  %v1897_v43 = vunpack.i.l.bf16 %v3003_v4  ;;  %v1907_v17 = vunpack.i.l.bf16 %v2999_v29  ;;  %v1901_v34 = vpop.permute.xlu1 %1900  ;;  %v1858_v29 = vunpack.i.h.bf16 %v2937_v18 }
 0x151   : > { %1353 = vmatpush.bf16.msra.mxu3 %v2800_v41  ;;  %1302 = vmatmul.bf16.vlgmr.msrb.gmra.mxu1 %v2782_v42  ;;  %v1195_v41 = vpack.c.bf16 %v3302_v14, %v1925_v33  ;;  %v1903_v27 = vunpack.i.h.bf16 %v1901_v34  ;;  %v1902_v35 = vunpack.i.l.bf16 %v1901_v34  ;;  %v693_v33 = vsel %vm691_vm10, %v1852_v44, %v1853_v16 }
 0x152   : > { %1362 = vmatpush.bf16.msra.mxu1 %v3299_v15  ;;  %v807_v39 = vsel %vm802_vm3, %v1828_v24, %v1897_v43  ;;  %v878_v37 = vsel %vm876_vm14, %v1907_v17, %v1908_v56  ;;  %v1898_v15 = vunpack.i.h.bf16 %v3003_v4  ;;  %v880_v24 = vsel %vm876_vm14, %v1887_v21, %v1888_v63 }
 0x153   : > { %1327 = vmatpush.bf16.msrb.mxu0 %v2786_v26  ;;  %v3304_v26 = vld [vmem:[#allocation10_spill] sm:$0xff]  ;;  %v1178_v13 = vpack.c.bf16 %v807_v39, %v770_v22  ;;  %v841_v31 = vsel %vm839_vm1, %v1902_v35, %v1903_v27  ;;  %v1878_v56 = vunpack.i.h.bf16 %v2941_v10  ;;  %v657_v21 = vsel %vm654_vm13, %v1838_v38, %v1867_v6 }
 0x154   : > { %1354 = vmatmul.bf16.vlgmr.msra.gmra.mxu3 %v2782_v42  ;;  %v1188_v4 = vpack.c.bf16 %v878_v37, %v841_v31  ;;  %v769_v48 = vsel %vm765_vm2, %v1892_v58, %v1893_v40  ;;  %v806_v8 = vsel %vm802_vm3, %v1897_v43, %v1898_v15  ;;  %v842_v38 = vsel %vm839_vm1, %v1883_v55, %v1902_v35  ;;  %v3320_v37 = vld [vmem:[#allocation16_spill] sm:$0xff] }
 0x155   : > { %1414 = vmatpush.bf16.msrb.mxu3 %v3300_v28  ;;  %v1173_v28 = vpack.c.bf16 %v731_v57, %v694_v51  ;;  %1340 = vmatpush.bf16.msrb.mxu2 %v1178_v13  ;;  %v730_v10 = vsel %vm728_vm11, %v1857_v49, %v1858_v29  ;;  %v1868_v44 = vunpack.i.h.bf16 %v2949_v20  ;;  %v1166_v61 = vpack.c.bf16 %v657_v21, %v620_v32  ;;  %v3310_v20 = vld [vmem:[#allocation35_spill] sm:$0xff]  ;;  %v3319_v13 = vld [vmem:[#allocation24_spill] sm:$0xff] }
 0x156   : > { %1363 = vmatpush.bf16.msra.mxu1 %v3304_v26  ;;  %1328 = vmatmul.bf16.vlgmr.msrb.gmra.mxu0 %v2782_v42  ;;  %v546_v58 = vsel %vm543_vm15, %v1843_v5, %v1872_v53  ;;  %v879_v18 = vsel %vm876_vm14, %v1888_v63, %v1907_v17  ;;  %v1179_v55 = vpack.c.bf16 %v806_v8, %v769_v48 }
 0x157   : > { %1388 = vmatpush.bf16.msra.mxu0 %v3305_v59  ;;  %v1911_v14 = vpop.permute.xlu0 %1910  ;;  %v1187_v57 = vpack.c.bf16 %v879_v18, %v842_v38  ;;  %v619_v5 = vsel %vm617_vm12, %v1862_v62, %v1863_v3  ;;  %v1174_v63 = vpack.c.bf16 %v730_v10, %v693_v33  ;;  %v1159_v11 = vpack.c.bf16 %v583_v36, %v546_v58  ;;  %v3326_v3 = vld [vmem:[#allocation15_spill] sm:$0xff] }
 0x158   : > { %v1913_v47 = vunpack.i.h.bf16 %v1911_v14  ;;  %v1912_v12 = vunpack.i.l.bf16 %v1911_v14  ;;  %v1916_v2 = vpop.permute.xlu1 %1915  ;;  %1503 = vmatmul.msk.bf16.vlgmr.msrb.gmra.mxu2 %vm1216_vm4, %v2747_v54  ;;  %v656_v23 = vsel %vm654_vm13, %v1867_v6, %v1868_v44  ;;  %v582_v27 = vsel %vm580_vm0, %v1877_v1, %v1878_v56  ;;  %v3311_v6 = vld [vmem:[#allocation34_spill] sm:$0xff] }
 0x159   : > { %1415 = vmatpush.bf16.msrb.mxu3 %v3308_v9  ;;  %1372 = vmatpush.bf16.msra.mxu2 %v1173_v28  ;;  %v1918_v25 = vunpack.i.h.bf16 %v1916_v2  ;;  %v1917_v43 = vunpack.i.l.bf16 %v1916_v2  ;;  %v1167_v22 = vpack.c.bf16 %v656_v23, %v619_v5  ;;  %v3312_v35 = vpack.c.bf16 %v3310_v20, %v3311_v6  ;;  %v3314_v9 = vld [vmem:[#allocation27_spill] sm:$0xff] }
 0x15a   : > { %1364 = vmatpush.bf16.msra.mxu1 %v3008_v52  ;;  %v767_v49 = vsel %vm765_vm2, %v1912_v12, %v1913_v47  ;;  %v768_v51 = vsel %vm765_vm2, %v1893_v40, %v1912_v12  ;;  %v1160_v30 = vpack.c.bf16 %v582_v27, %v545_v0  ;;  %v3315_v39 = vpack.c.bf16 %v3313_v7, %v3314_v9  ;;  %v3317_v40 = vld [vmem:[#allocation26_spill] sm:$0xff] }
 0x15b   : > { %1389 = vmatpush.bf16.msra.mxu0 %v3309_v50  ;;  %v805_v17 = vsel %vm802_vm3, %v1898_v15, %v1917_v43  ;;  %v804_v34 = vsel %vm802_vm3, %v1917_v43, %v1918_v25  ;;  %v3318_v16 = vpack.c.bf16 %v3316_v19, %v3317_v40  ;;  %v3321_v15 = vpack.c.bf16 %v3319_v13, %v3320_v37 }
 0x15c   : > { %v1181_v62 = vpack.c.bf16 %v804_v34, %v767_v49  ;;  %v1180_v59 = vpack.c.bf16 %v805_v17, %v768_v51 }
 0x15d   : > { %1416 = vmatpush.bf16.msrb.mxu3 %v1195_v41  ;;  %v1186_v41 = vpack.c.bf16 %v880_v24, %v843_v60  ;;  %1373 = vmatpush.bf16.msra.mxu2 %v1166_v61  ;;  %v3322_v60 = vld [vmem:[#allocation33_spill] sm:$0xff]  ;;  %v3323_v24 = vld [vmem:[#allocation28_spill] sm:$0xff] }
 0x15e   : > { %v3324_v31 = vpack.c.bf16 %v3322_v60, %v3323_v24 }
 0x15f   : > { %1365 = vmatpush.bf16.msra.mxu1 %v1186_v41  ;;  %1390 = vmatpush.bf16.msra.mxu0 %v3014_v46 }
 0x161   : > { %1417 = vmatpush.bf16.msrb.mxu3 %v1188_v4  ;;  %1374 = vmatpush.bf16.msra.mxu2 %v1159_v11 }
 0x163   : > { %1366 = vmatpush.bf16.msra.mxu1 %v1179_v55  ;;  %1391 = vmatpush.bf16.msra.mxu0 %v1187_v57 }
 0x165   : > { %1418 = vmatpush.bf16.msrb.mxu3 %v1181_v62  ;;  %1375 = vmatpush.bf16.msra.mxu2 %v3312_v35 }
 0x166   : > { %1504 = vmatmul.msk.bf16.vlgmr.msra.gmra.mxu1 %vm1216_vm4, %v2747_v54 }
 0x167   : > { %1398 = vmatpush.bf16.msrb.mxu1 %v1174_v63  ;;  %1392 = vmatpush.bf16.msra.mxu0 %v1180_v59 }
 0x168   : > { %1506 = vmatmul.msk.bf16.vlgmr.msrb.gmra.mxu3 %vm1216_vm4, %v2747_v54 }
 0x169   : > { %1376 = vmatpush.bf16.msra.mxu2 %v3315_v39 }
 0x16a   : > { %1505 = vmatmul.msk.bf16.vlgmr.msra.gmra.mxu0 %vm1216_vm4, %v2747_v54  ;;  %v3325_v54 = vld [vmem:[#allocation8_spill] sm:$0xff] }
 0x16b   : > { %1399 = vmatpush.bf16.msrb.mxu1 %v1167_v22  ;;  %v3327_v29 = vpack.c.bf16 %v3325_v54, %v3326_v3 }
 0x16d   : > { %1377 = vmatpush.bf16.msra.mxu2 %v3321_v15 }
 0x16f   : > { %1400 = vmatpush.bf16.msrb.mxu1 %v1160_v30 }
 0x171   : > { %1378 = vmatpush.bf16.msra.mxu2 %v3304_v26 }
 0x173   : > { %1401 = vmatpush.bf16.msrb.mxu1 %v3318_v16 }
 0x175   : > { %1379 = vmatpush.bf16.msra.mxu2 %v3008_v52 }
 0x177   : > { %1402 = vmatpush.bf16.msrb.mxu1 %v3324_v31 }
 0x178   : > { %1380 = vmatmul.bf16.vlgmr.msra.gmra.mxu2 %v2782_v42 }
 0x17b   : > { %1403 = vmatpush.bf16.msrb.mxu1 %v3327_v29 }
 0x17f   : > { %1404 = vmatpush.bf16.msrb.mxu1 %v3309_v50 }
 0x183   : > { %1405 = vmatpush.bf16.msrb.mxu1 %v3014_v46 }
 0x186   : > { %1406 = vmatmul.bf16.vlgmr.msrb.gmra.mxu1 %v2782_v42 }
 0x1a1   : > { %v1214_v32 = vpop.permute.xlu2 %1213 }
 0x1a3   : > { %v1290_v28 = vpop.f32.mrf.mxu3 }
 0x1a7   : > { %v1277_v53 = vpop.f32.mrf.mxu2 }
 0x1a8   : > { %v1278_v26 = vadd.f32 %v1277_v53, %v1214_v32 }
 0x1aa   : > { %v1291_v4 = vadd.f32 %v1290_v28, %v1278_v26 }
 0x1ab   : > { %v1292_v56 = vpop.f32.mrf.mxu3 }
 0x1ac   : > { %v1425_v50 = vmax.f32 %v1291_v4, 0.0 }
 0x1ae   : > { %v1264_v21 = vpop.f32.mrf.mxu1  ;;  %1432 = vst [vmem:[%s3166_s21 + $0x8] sm:$0xff] %v1425_v50 }
 0x1af   : > { %v1279_v52 = vpop.f32.mrf.mxu2 }
 0x1b3   : > { %v1251_v46 = vpop.f32.mrf.mxu0 }
 0x1b4   : > { %v1252_v42 = vadd.f32 %v1251_v46, %v1214_v32 }
 0x1b6   : > { %v1265_v1 = vadd.f32 %v1264_v21, %v1252_v42  ;;  %v1266_v14 = vpop.f32.mrf.mxu1 }
 0x1b7   : > { %v1316_v33 = vpop.f32.mrf.mxu3 }
 0x1b8   : > { %v1424_v41 = vmax.f32 %v1265_v1, 0.0 }
 0x1ba   : > { %1431 = vst [vmem:[%s3166_s21] sm:$0xff] %v1424_v41 }
 0x1bb   : > { %v1253_v48 = vpop.f32.mrf.mxu0 }
 0x1bf   : > { %v1318_v47 = vpop.f32.mrf.mxu3 }
 0x1ce   : > { %v1303_v12 = vpop.f32.mrf.mxu1 }
 0x1cf   : > { %v1304_v8 = vadd.f32 %v1303_v12, %v1214_v32 }
 0x1d1   : > { %v1317_v38 = vadd.f32 %v1316_v33, %v1304_v8 }
 0x1d3   : > { %v1329_v10 = vpop.f32.mrf.mxu0  ;;  %v1426_v44 = vmax.f32 %v1317_v38, 0.0 }
 0x1d4   : > { %v1330_v25 = vadd.f32 %v1329_v10, %v1214_v32 }
 0x1d5   : > { %1433 = vst [vmem:[%s3166_s21 + $0x10] sm:$0xff] %v1426_v44 }
 0x1d6   : > { %v1305_v61 = vpop.f32.mrf.mxu1 }
 0x1d7   : > { %v1355_v2 = vpop.f32.mrf.mxu3 }
 0x1d8   : > { %v1356_v43 = vadd.f32 %v1355_v2, %v1214_v32 }
 0x1db   : > { %v1331_v58 = vpop.f32.mrf.mxu0  ;;  %v1342_v49 = vpop.f32.mrf.mxu2 }
 0x1dc   : > { %v1343_v57 = vadd.f32 %v1342_v49, %v1330_v25 }
 0x1de   : > { %v1427_v5 = vmax.f32 %v1343_v57, 0.0 }
 0x1df   : > { %v1357_v18 = vpop.f32.mrf.mxu3 }
 0x1e0   : > { %1434 = vst [vmem:[%s3166_s21 + $0x18] sm:$0xff] %v1427_v5 }
 0x1e3   : > { %v1368_v55 = vpop.f32.mrf.mxu1  ;;  %v1344_v17 = vpop.f32.mrf.mxu2 }
 0x1e4   : > { %v1369_v36 = vadd.f32 %v1368_v55, %v1356_v43 }
 0x1e6   : > { %v1428_v63 = vmax.f32 %v1369_v36, 0.0 }
 0x1e7   : > { %v1394_v51 = vpop.f32.mrf.mxu0 }
 0x1e8   : > { %1435 = vst [vmem:[%s3166_s21 + $0x20] sm:$0xff] %v1428_v63 }
 0x1eb   : > { %v1370_v34 = vpop.f32.mrf.mxu1  ;;  %v1420_v45 = vpop.f32.mrf.mxu3 }
 0x1ef   : > { %v1396_v11 = vpop.f32.mrf.mxu0 }
 0x1f3   : > { %v1422_v23 = vpop.f32.mrf.mxu3 }
 0x1fb   : > { %v1381_v62 = vpop.f32.mrf.mxu2 }
 0x1fc   : > { %v1382_v59 = vadd.f32 %v1381_v62, %v1214_v32 }
 0x1fe   : > { %v1395_v27 = vadd.f32 %v1394_v51, %v1382_v59 }
 0x200   : > { %v1429_v6 = vmax.f32 %v1395_v27, 0.0 }
 0x202   : > { %1436 = vst [vmem:[%s3166_s21 + $0x28] sm:$0xff] %v1429_v6 }
 0x203   : > { %v1407_v22 = vpop.f32.mrf.mxu1  ;;  %v1383_v30 = vpop.f32.mrf.mxu2 }
 0x204   : > { %v1408_v0 = vadd.f32 %v1407_v22, %v1214_v32 }
 0x206   : > { %v1421_v20 = vadd.f32 %v1420_v45, %v1408_v0 }
 0x208   : > { %v1430_v35 = vmax.f32 %v1421_v20, 0.0 }
 0x20a   : > { %1437 = vst [vmem:[%s3166_s21 + $0x30] sm:$0xff] %v1430_v35 }
 0x20b   : > { %v1409_v7 = vpop.f32.mrf.mxu1 }
 0x20c PF: > { %s13_s12 = sadd.s32 1, %s1933_s12  }
 0x20d   : > { %p10_p4 = scmp.ge.s32.totalorder %s13_s12, 4  }
 0x20f   :  { %12 = sbr.rel (!%p10_p4) target bundleno = 1 (0x1), region = 62 }

// kernel: cnn_cifar_forward.5
= control target key start
LH: loop header
LB: loop body
LE: loop exit
PB: predicated region body
PF: predicated region fallthrough
CT: control target
= control target key end

     0   :  { %s671_s0 = inlined_call_operand.vmem [shape: f32[2,512], index: 0, kind: input, shape index: {}]   ;;  %s672_s1 = inlined_call_operand.vmem [shape: f32[512,128], index: 1, kind: input, shape index: {}]   ;;  %s673_s2 = inlined_call_operand.vmem [shape: f32[1,128], index: 2, kind: input, shape index: {}]   ;;  %s674_s3 = inlined_call_operand.vmem [shape: f32[128,128], index: 3, kind: input, shape index: {}]   ;;  %s675_s4 = inlined_call_operand.vmem [shape: f32[1,128], index: 4, kind: input, shape index: {}]   ;;  %s676_s5 = inlined_call_operand.vmem [shape: f32[128,128], index: 5, kind: input, shape index: {}]   ;;  %s677_s6 = inlined_call_operand.vmem [shape: f32[1,128], index: 6, kind: input, shape index: {}]   ;;  %s678_s7 = inlined_call_operand.hbm [shape: f32[2,128], index: 7, kind: output, shape index: {}]  }
   0x1   :  { %v56_v0 = vld [vmem:[%s672_s1 + $0x70] sm:$0xff]  ;;  %v57_v1 = vld [vmem:[%s672_s1 + $0x78] sm:$0xff]  ;;  %v54_v11 = vld [vmem:[%s672_s1 + $0x60] sm:$0xff] }
   0x2   :  { %v72_v2 = vld [vmem:[%s672_s1 + $0xf0] sm:$0xff]  ;;  %v113_v3 = vpack.c.bf16 %v57_v1, %v56_v0  ;;  %v73_v4 = vld [vmem:[%s672_s1 + $0xf8] sm:$0xff]  ;;  %v55_v13 = vld [vmem:[%s672_s1 + $0x68] sm:$0xff] }
   0x3   :  { %v88_v5 = vld [vmem:[%s672_s1 + $0x170] sm:$0xff]  ;;  %v89_v6 = vld [vmem:[%s672_s1 + $0x178] sm:$0xff]  ;;  %v121_v7 = vpack.c.bf16 %v73_v4, %v72_v2  ;;  %v70_v14 = vld [vmem:[%s672_s1 + $0xe0] sm:$0xff]  ;;  %v112_v16 = vpack.c.bf16 %v55_v13, %v54_v11 }
   0x4   :  { %v129_v8 = vpack.c.bf16 %v89_v6, %v88_v5  ;;  %v104_v9 = vld [vmem:[%s672_s1 + $0x1f0] sm:$0xff]  ;;  %v105_v10 = vld [vmem:[%s672_s1 + $0x1f8] sm:$0xff]  ;;  %142 = vmatpush.bf16.msra.mxu0 %v113_v3  ;;  %v71_v15 = vld [vmem:[%s672_s1 + $0xe8] sm:$0xff] }
   0x5   :  { %v137_v12 = vpack.c.bf16 %v105_v10, %v104_v9  ;;  %155 = vmatpush.bf16.msra.mxu1 %v121_v7  ;;  %v120_v17 = vpack.c.bf16 %v71_v15, %v70_v14  ;;  %v86_v18 = vld [vmem:[%s672_s1 + $0x160] sm:$0xff]  ;;  %v87_v19 = vld [vmem:[%s672_s1 + $0x168] sm:$0xff]  ;;  %v52_v23 = vld [vmem:[%s672_s1 + $0x50] sm:$0xff] }
   0x6   :  { %168 = vmatpush.bf16.msra.mxu2 %v129_v8  ;;  %v102_v20 = vld [vmem:[%s672_s1 + $0x1e0] sm:$0xff]  ;;  %v128_v21 = vpack.c.bf16 %v87_v19, %v86_v18  ;;  %v103_v22 = vld [vmem:[%s672_s1 + $0x1e8] sm:$0xff]  ;;  %v53_v24 = vld [vmem:[%s672_s1 + $0x58] sm:$0xff] }
   0x7   :  { %181 = vmatpush.bf16.msra.mxu3 %v137_v12  ;;  %v136_v25 = vpack.c.bf16 %v103_v22, %v102_v20  ;;  %v68_v26 = vld [vmem:[%s672_s1 + $0xd0] sm:$0xff]  ;;  %v69_v27 = vld [vmem:[%s672_s1 + $0xd8] sm:$0xff]  ;;  %v111_v29 = vpack.c.bf16 %v53_v24, %v52_v23  ;;  %v50_v35 = vld [vmem:[%s672_s1 + $0x40] sm:$0xff] }
   0x8   :  { %v84_v28 = vld [vmem:[%s672_s1 + $0x150] sm:$0xff]  ;;  %143 = vmatpush.bf16.msra.mxu0 %v112_v16  ;;  %v85_v30 = vld [vmem:[%s672_s1 + $0x158] sm:$0xff]  ;;  %v119_v33 = vpack.c.bf16 %v69_v27, %v68_v26  ;;  %v51_v36 = vld [vmem:[%s672_s1 + $0x48] sm:$0xff] }
   0x9   :  { %v100_v31 = vld [vmem:[%s672_s1 + $0x1d0] sm:$0xff]  ;;  %v101_v32 = vld [vmem:[%s672_s1 + $0x1d8] sm:$0xff]  ;;  %156 = vmatpush.bf16.msra.mxu1 %v120_v17  ;;  %v127_v34 = vpack.c.bf16 %v85_v30, %v84_v28  ;;  %v66_v37 = vld [vmem:[%s672_s1 + $0xc0] sm:$0xff]  ;;  %v110_v44 = vpack.c.bf16 %v51_v36, %v50_v35 }
   0xa   :  { %169 = vmatpush.bf16.msra.mxu2 %v128_v21  ;;  %v135_v38 = vpack.c.bf16 %v101_v32, %v100_v31  ;;  %v67_v39 = vld [vmem:[%s672_s1 + $0xc8] sm:$0xff]  ;;  %v82_v40 = vld [vmem:[%s672_s1 + $0x140] sm:$0xff]  ;;  %v48_v47 = vld [vmem:[%s672_s1 + $0x30] sm:$0xff] }
   0xb   :  { %182 = vmatpush.bf16.msra.mxu3 %v136_v25  ;;  %v83_v41 = vld [vmem:[%s672_s1 + $0x148] sm:$0xff]  ;;  %v98_v42 = vld [vmem:[%s672_s1 + $0x1c0] sm:$0xff]  ;;  %v118_v45 = vpack.c.bf16 %v67_v39, %v66_v37  ;;  %v49_v48 = vld [vmem:[%s672_s1 + $0x38] sm:$0xff] }
   0xc   :  { %v99_v43 = vld [vmem:[%s672_s1 + $0x1c8] sm:$0xff]  ;;  %144 = vmatpush.bf16.msra.mxu0 %v111_v29  ;;  %v126_v46 = vpack.c.bf16 %v83_v41, %v82_v40  ;;  %v64_v49 = vld [vmem:[%s672_s1 + $0xb0] sm:$0xff]  ;;  %v65_v51 = vld [vmem:[%s672_s1 + $0xb8] sm:$0xff]  ;;  %v109_v56 = vpack.c.bf16 %v49_v48, %v48_v47 }
   0xd   :  { %157 = vmatpush.bf16.msra.mxu1 %v119_v33  ;;  %v134_v50 = vpack.c.bf16 %v99_v43, %v98_v42  ;;  %v80_v52 = vld [vmem:[%s672_s1 + $0x130] sm:$0xff]  ;;  %v81_v53 = vld [vmem:[%s672_s1 + $0x138] sm:$0xff]  ;;  %v117_v57 = vpack.c.bf16 %v65_v51, %v64_v49  ;;  %v46_v59 = vld [vmem:[%s672_s1 + $0x20] sm:$0xff] }
   0xe   :  { %170 = vmatpush.bf16.msra.mxu2 %v127_v34  ;;  %v96_v54 = vld [vmem:[%s672_s1 + $0x1b0] sm:$0xff]  ;;  %v97_v55 = vld [vmem:[%s672_s1 + $0x1b8] sm:$0xff]  ;;  %v125_v58 = vpack.c.bf16 %v81_v53, %v80_v52  ;;  %v47_v60 = vld [vmem:[%s672_s1 + $0x28] sm:$0xff] }
   0xf   :  { %183 = vmatpush.bf16.msra.mxu3 %v135_v38  ;;  %v62_v61 = vld [vmem:[%s672_s1 + $0xa0] sm:$0xff]  ;;  %v133_v62 = vpack.c.bf16 %v97_v55, %v96_v54  ;;  %v63_v63 = vld [vmem:[%s672_s1 + $0xa8] sm:$0xff]  ;;  %v108_v4 = vpack.c.bf16 %v47_v60, %v46_v59  ;;  %v44_v5 = vld [vmem:[%s672_s1 + $0x10] sm:$0xff] }
  0x10   :  { %145 = vmatpush.bf16.msra.mxu0 %v110_v44  ;;  %v78_v0 = vld [vmem:[%s672_s1 + $0x120] sm:$0xff]  ;;  %v79_v1 = vld [vmem:[%s672_s1 + $0x128] sm:$0xff]  ;;  %v45_v6 = vld [vmem:[%s672_s1 + $0x18] sm:$0xff]  ;;  %v116_v7 = vpack.c.bf16 %v63_v63, %v62_v61 }
  0x11   :  { %158 = vmatpush.bf16.msra.mxu1 %v118_v45  ;;  %v94_v2 = vld [vmem:[%s672_s1 + $0x1a0] sm:$0xff]  ;;  %v95_v3 = vld [vmem:[%s672_s1 + $0x1a8] sm:$0xff]  ;;  %v124_v8 = vpack.c.bf16 %v79_v1, %v78_v0  ;;  %v60_v9 = vld [vmem:[%s672_s1 + $0x90] sm:$0xff]  ;;  %v107_v19 = vpack.c.bf16 %v45_v6, %v44_v5 }
  0x12   :  { %171 = vmatpush.bf16.msra.mxu2 %v126_v46  ;;  %v61_v10 = vld [vmem:[%s672_s1 + $0x98] sm:$0xff]  ;;  %v76_v11 = vld [vmem:[%s672_s1 + $0x110] sm:$0xff]  ;;  %v132_v12 = vpack.c.bf16 %v95_v3, %v94_v2  ;;  %v27_v15 = vld [vmem:[%s671_s0] sm:$0xff] }
  0x13   :  { %184 = vmatpush.bf16.msra.mxu3 %v134_v50  ;;  %v77_v13 = vld [vmem:[%s672_s1 + $0x118] sm:$0xff]  ;;  %v92_v14 = vld [vmem:[%s672_s1 + $0x190] sm:$0xff]  ;;  %v42_v17 = vld [vmem:[%s672_s1] sm:$0xff]  ;;  %29 = vst [vmem:[#allocation1] ss:$4 sm:$0xff] %v27_v15  ;;  %v115_v23 = vpack.c.bf16 %v61_v10, %v60_v9 }
  0x14   :  { %146 = vmatpush.bf16.msra.mxu0 %v109_v56  ;;  %v93_v16 = vld [vmem:[%s672_s1 + $0x198] sm:$0xff]  ;;  %v43_v18 = vld [vmem:[%s672_s1 + $0x8] sm:$0xff]  ;;  %v58_v20 = vld [vmem:[%s672_s1 + $0x80] sm:$0xff]  ;;  %v123_v24 = vpack.c.bf16 %v77_v13, %v76_v11 }
  0x15   :  { %159 = vmatpush.bf16.msra.mxu1 %v117_v57  ;;  %v59_v21 = vld [vmem:[%s672_s1 + $0x88] sm:$0xff]  ;;  %v74_v22 = vld [vmem:[%s672_s1 + $0x100] sm:$0xff]  ;;  %v131_v27 = vpack.c.bf16 %v93_v16, %v92_v14 }
  0x16   :  { %172 = vmatpush.bf16.msra.mxu2 %v125_v58  ;;  %v75_v25 = vld [vmem:[%s672_s1 + $0x108] sm:$0xff]  ;;  %v90_v26 = vld [vmem:[%s672_s1 + $0x180] sm:$0xff] }
  0x17   :  { %185 = vmatpush.bf16.msra.mxu3 %v133_v62 }
  0x18   :  { %147 = vmatpush.bf16.msra.mxu0 %v108_v4 }
  0x19   :  { %160 = vmatpush.bf16.msra.mxu1 %v116_v7 }
  0x1a   :  { %173 = vmatpush.bf16.msra.mxu2 %v124_v8 }
  0x1b   :  { %186 = vmatpush.bf16.msra.mxu3 %v132_v12 }
  0x1c   :  { %12 = vsyncpa [#allocation3], 0  ;;  %v91_v28 = vld [vmem:[%s672_s1 + $0x188] sm:$0xff]  ;;  %v210_v29 = vld [vmem:[%s674_s3 + $0x70] sm:$0xff]  ;;  %148 = vmatpush.bf16.msra.mxu0 %v107_v19  ;;  %v106_v31 = vpack.c.bf16 %v43_v18, %v42_v17  ;;  %v114_v32 = vpack.c.bf16 %v59_v21, %v58_v20  ;;  %v122_v33 = vpack.c.bf16 %v75_v25, %v74_v22  ;;  %s327_s30 = smov [#allocation2]   ;;  %s288_s10 = sshll.u32 %s678_s7, 4  ;;  %s289_s10 = int_to_ptr.hbm [resolvable:$true] %s288_s10 }
  0x1d   :  { %v211_v30 = vld [vmem:[%s674_s3 + $0x78] sm:$0xff]  ;;  %161 = vmatpush.bf16.msra.mxu1 %v115_v23  ;;  %v208_v34 = vld [vmem:[%s674_s3 + $0x60] sm:$0xff]  ;;  %v209_v35 = vld [vmem:[%s674_s3 + $0x68] sm:$0xff]  ;;  %v130_v36 = vpack.c.bf16 %v91_v28, %v90_v26  ;;  %s286_s8 = sshll.u32 %s327_s30, 4  ;;  %s287_s8 = int_to_ptr.vmem [resolvable:$true] %s286_s8 }
  0x1e   :  { %174 = vmatpush.bf16.msra.mxu2 %v123_v24  ;;  %v30_v37 = vld.sshfl [vmem:[#allocation1] sm:$0xff pattern:$0x73625140]  ;;  %v31_v38 = vld.sshfl [vmem:[#allocation1 + $0x8] sm:$0xff pattern:$0x73625140]  ;;  %v219_v39 = vpack.c.bf16 %v211_v30, %v210_v29  ;;  %v218_v46 = vpack.c.bf16 %v209_v35, %v208_v34 }
  0x1f   :  { %187 = vmatpush.bf16.msra.mxu3 %v131_v27  ;;  %v38_v40 = vpack.c.bf16 %v30_v37, %v30_v37  ;;  %v32_v41 = vld.sshfl [vmem:[#allocation1 + $0x10] sm:$0xff pattern:$0x73625140]  ;;  %v33_v42 = vld.sshfl [vmem:[#allocation1 + $0x18] sm:$0xff pattern:$0x73625140]  ;;  %v39_v43 = vpack.c.bf16 %v31_v38, %v31_v38 }
  0x20   :  { %149 = vmatpush.bf16.msra.mxu0 %v106_v31  ;;  %v40_v44 = vpack.c.bf16 %v32_v41, %v32_v41  ;;  %v41_v45 = vpack.c.bf16 %v33_v42, %v33_v42  ;;  %v206_v47 = vld [vmem:[%s674_s3 + $0x50] sm:$0xff]  ;;  %v207_v48 = vld [vmem:[%s674_s3 + $0x58] sm:$0xff]  ;;  %v204_v50 = vld [vmem:[%s674_s3 + $0x40] sm:$0xff] }
  0x21   :  { %162 = vmatpush.bf16.msra.mxu1 %v114_v32  ;;  %v217_v49 = vpack.c.bf16 %v207_v48, %v206_v47  ;;  %v205_v51 = vld [vmem:[%s674_s3 + $0x48] sm:$0xff]  ;;  %v202_v53 = vld [vmem:[%s674_s3 + $0x30] sm:$0xff]  ;;  %v203_v54 = vld [vmem:[%s674_s3 + $0x38] sm:$0xff] }
  0x22   :  { %175 = vmatpush.bf16.msra.mxu2 %v122_v33  ;;  %v216_v52 = vpack.c.bf16 %v205_v51, %v204_v50  ;;  %v215_v55 = vpack.c.bf16 %v203_v54, %v202_v53  ;;  %v200_v56 = vld [vmem:[%s674_s3 + $0x20] sm:$0xff]  ;;  %v201_v57 = vld [vmem:[%s674_s3 + $0x28] sm:$0xff]  ;;  %v198_v59 = vld [vmem:[%s674_s3 + $0x10] sm:$0xff] }
  0x23   :  { %188 = vmatpush.bf16.msra.mxu3 %v130_v36  ;;  %150 = vmatmul.bf16.vlgmr.msra.gmra.mxu0 %v38_v40  ;;  %v214_v58 = vpack.c.bf16 %v201_v57, %v200_v56  ;;  %v199_v60 = vld [vmem:[%s674_s3 + $0x18] sm:$0xff]  ;;  %v196_v62 = vld [vmem:[%s674_s3] sm:$0xff]  ;;  %v197_v63 = vld [vmem:[%s674_s3 + $0x8] sm:$0xff] }
  0x24   :  { %224 = vmatpush.bf16.msrb.mxu0 %v219_v39  ;;  %163 = vmatmul.bf16.vlgmr.msra.gmra.mxu1 %v39_v43  ;;  %v213_v61 = vpack.c.bf16 %v199_v60, %v198_v59  ;;  %v212_v0 = vpack.c.bf16 %v197_v63, %v196_v62  ;;  %v253_v1 = vld [vmem:[%s676_s5 + $0x70] sm:$0xff]  ;;  %v254_v2 = vld [vmem:[%s676_s5 + $0x78] sm:$0xff]  ;;  %v251_v3 = vld [vmem:[%s676_s5 + $0x60] sm:$0xff] }
  0x25   :  { %176 = vmatmul.bf16.vlgmr.msra.gmra.mxu2 %v40_v44  ;;  %v262_v4 = vpack.c.bf16 %v254_v2, %v253_v1  ;;  %v252_v5 = vld [vmem:[%s676_s5 + $0x68] sm:$0xff]  ;;  %v249_v7 = vld [vmem:[%s676_s5 + $0x50] sm:$0xff]  ;;  %v250_v8 = vld [vmem:[%s676_s5 + $0x58] sm:$0xff] }
  0x26   :  { %189 = vmatmul.bf16.vlgmr.msra.gmra.mxu3 %v41_v45  ;;  %v261_v6 = vpack.c.bf16 %v252_v5, %v251_v3  ;;  %v260_v9 = vpack.c.bf16 %v250_v8, %v249_v7  ;;  %v247_v10 = vld [vmem:[%s676_s5 + $0x40] sm:$0xff]  ;;  %v248_v11 = vld [vmem:[%s676_s5 + $0x48] sm:$0xff]  ;;  %v245_v13 = vld [vmem:[%s676_s5 + $0x30] sm:$0xff] }
  0x27   :  { %267 = vmatpush.bf16.msrb.mxu1 %v262_v4  ;;  %v259_v12 = vpack.c.bf16 %v248_v11, %v247_v10  ;;  %v246_v14 = vld [vmem:[%s676_s5 + $0x38] sm:$0xff]  ;;  %v298_v15 = vld [vmem:[%s673_s2] ss:$0 sm:$0xff]  ;;  %v244_v19 = vld [vmem:[%s676_s5 + $0x28] sm:$0xff] }
  0x28   :  { %225 = vmatpush.bf16.msrb.mxu0 %v218_v46  ;;  %v258_v16 = vpack.c.bf16 %v246_v14, %v245_v13  ;;  %v243_v18 = vld [vmem:[%s676_s5 + $0x20] sm:$0xff]  ;;  %v241_v34 = vld [vmem:[%s676_s5 + $0x10] sm:$0xff]  ;;  %v242_v35 = vld [vmem:[%s676_s5 + $0x18] sm:$0xff] }
  0x29   :  { %v257_v22 = vpack.c.bf16 %v244_v19, %v243_v18  ;;  %v256_v36 = vpack.c.bf16 %v242_v35, %v241_v34  ;;  %v239_v37 = vld [vmem:[%s676_s5] sm:$0xff]  ;;  %v240_v38 = vld [vmem:[%s676_s5 + $0x8] sm:$0xff] }
  0x2a   :  { %v255_v39 = vpack.c.bf16 %v240_v38, %v239_v37  ;;  %v299_v40 = vld [vmem:[%s675_s4] ss:$0 sm:$0xff] }
  0x2b   :  { %268 = vmatpush.bf16.msrb.mxu1 %v261_v6  ;;  %v300_v46 = vld [vmem:[%s677_s6] ss:$0 sm:$0xff] }
  0x2c   :  { %226 = vmatpush.bf16.msrb.mxu0 %v217_v49 }
  0x2f   :  { %269 = vmatpush.bf16.msrb.mxu1 %v260_v9 }
  0x30   :  { %227 = vmatpush.bf16.msrb.mxu0 %v216_v52 }
  0x33   :  { %270 = vmatpush.bf16.msrb.mxu1 %v259_v12 }
  0x34   :  { %228 = vmatpush.bf16.msrb.mxu0 %v215_v55 }
  0x37   :  { %271 = vmatpush.bf16.msrb.mxu1 %v258_v16 }
  0x38   :  { %229 = vmatpush.bf16.msrb.mxu0 %v214_v58 }
  0x3b   :  { %272 = vmatpush.bf16.msrb.mxu1 %v257_v22 }
  0x3c   :  { %230 = vmatpush.bf16.msrb.mxu0 %v213_v61 }
  0x3f   :  { %273 = vmatpush.bf16.msrb.mxu1 %v256_v36 }
  0x40   :  { %231 = vmatpush.bf16.msrb.mxu0 %v212_v0 }
  0x43   :  { %274 = vmatpush.bf16.msrb.mxu1 %v255_v39 }
  0xa0   :  { %v151_v17 = vpop.f32.mrf.mxu0 }
  0xa1   :  { %v152_v20 = vadd.f32 %v298_v15, %v151_v17  ;;  %v164_v21 = vpop.f32.mrf.mxu1 }
  0xa3   :  { %v165_v23 = vadd.f32 %v164_v21, %v152_v20 }
  0xa8   :  { %v177_v24 = vpop.f32.mrf.mxu2  ;;  %v153_v27 = vpop.f32.mrf.mxu0 }
  0xa9   :  { %v178_v25 = vadd.f32 %v177_v24, %v165_v23  ;;  %v190_v26 = vpop.f32.mrf.mxu3  ;;  %v166_v28 = vpop.f32.mrf.mxu1 }
  0xab   :  { %v191_v29 = vadd.f32 %v190_v26, %v178_v25 }
  0xad   :  { %v194_v30 = vmax.f32 %v191_v29, 0.0 }
  0xaf   :  { %v195_v31 = vpack.c.bf16 %v194_v30, %v194_v30 }
  0xb0   :  { %v179_v32 = vpop.f32.mrf.mxu2 }
  0xb1   :  { %v192_v33 = vpop.f32.mrf.mxu3  ;;  %232 = vmatmul.bf16.vlgmr.msrb.gmra.mxu0 %v195_v31 }
 0x12e   :  { %v233_v41 = vpop.f32.mrf.mxu0 }
 0x12f   :  { %v234_v42 = vadd.f32 %v299_v40, %v233_v41 }
 0x131   :  { %v237_v43 = vmax.f32 %v234_v42, 0.0 }
 0x133   :  { %v238_v44 = vpack.c.bf16 %v237_v43, %v237_v43 }
 0x135   :  { %275 = vmatmul.bf16.vlgmr.msrb.gmra.mxu1 %v238_v44 }
 0x136   :  { %v235_v45 = vpop.f32.mrf.mxu0 }
 0x1b2   :  { %v276_v47 = vpop.f32.mrf.mxu1 }
 0x1b3   :  { %v277_v48 = vadd.f32 %v300_v46, %v276_v47 }
 0x1b5   :  { %280 = vst [vmem:[#allocation2] sm:$0x3] %v277_v48 }
 0x1b6   :  { %291 = dma.vmem_to_hbm [thread:$0]  %s287_s8, 32, %s289_s10, [#allocation3]  }
 0x1ba   :  { %v278_v49 = vpop.f32.mrf.mxu1 }
 0x1bb   :  { %325 = dma.done.wait [#allocation3], 32  }
 0x1bc   :  { %326 = vsyncadd [#allocation3], 4294967264 }
 0x1bd   :  { %296 = vsyncpa [#allocation3], 1 }

</bundles_post_ra>
